<compile_context>
chip_gen: v7x
topology: tpu7x:2x2x1
jax: 0.10.0
libtpu: 0.0.40
codegen_flags: <defaults>
</compile_context>

<pallas_src>
import functools
from typing import List

import numpy as np
import jax
import jax.numpy as jnp
from jax import lax
from jax.experimental import pallas as pl
from jax.experimental.pallas import tpu as pltpu


# ----------------------------- helpers ------------------------------------- #
def _shift_left_lanes(a, k):
    """a[..., s] -> a[..., s + k], zero-filling the last k lanes (static k)."""
    if k == 0:
        return a
    pad = jnp.zeros(a.shape[:-1] + (k,), a.dtype)
    return jnp.concatenate([a[..., k:], pad], axis=-1)


# ----------------------------- Pallas kernel ------------------------------- #
def _chunker_kernel(x_ref, m_ref, out_ref, *, threshold: float, limit: int,
                    eps: float, matmul_dtype):
    x = x_ref[...]            # (TB, S, H) f32 block of batch rows
    m_row = m_ref[...]        # (TB, 1, S) f32 regular-token mask (s on lanes)
    TB, S, H = x.shape

    # --- single MXU matmul: batched Gram,  G[b, j, s] = x_j . x_s ---------- #
    xg = x.astype(matmul_dtype)
    G = jnp.einsum('bih,bjh->bij', xg, xg,
                   preferred_element_type=jnp.float32)          # (TB, S, S)

    # per-token norms straight from x, column layout (member j on sublanes)
    xnorm_col = jnp.sqrt(jnp.sum(x * x, axis=-1, keepdims=True))  # (TB, S, 1)

    rows = lax.broadcasted_iota(jnp.int32, (S, S), 0)   # member index j
    cols = lax.broadcasted_iota(jnp.int32, (S, S), 1)   # span start s
    col_s = lax.broadcasted_iota(jnp.int32, (1, 1, S), 2)

    big = jnp.float32(3.0)    # > any cosine, used to mask the min

    # L = 1 state; updated incrementally across the (small, static) L loop.
    win_dot = G               # win_dot[b, j, s] = sum_{k<L} G[b, j, s+k]
    msum = m_row              # running sum of the mask over the span
    inband = rows == cols     # (S, S): s <= j < s + L

    for L in range(1, limit + 1):
        if L > 1:
            k = L - 1
            win_dot = win_dot + _shift_left_lanes(G, k)
            msum = msum + _shift_left_lanes(m_row, k)
            inband = inband | (rows == cols + k)

        band3 = inband[None, :, :]                                   # (1, S, S)

        # ||sum_{i in span} x_i||^2 = sum_{j in span} win_dot[b, j, s]
        wn2 = jnp.sum(jnp.where(band3, win_dot, 0.0),
                      axis=1, keepdims=True)                         # (TB, 1, S)
        wn = jnp.sqrt(jnp.maximum(wn2, 0.0))

        # cos(center, x_j) = win_dot / max(wn * ||x_j||, L*eps)  (1/L cancels)
        denom = jnp.maximum(wn * xnorm_col, jnp.float32(L * eps))    # (TB, S, S)
        cosm = win_dot * pl.reciprocal(denom, approx=True)

        worst = jnp.min(jnp.where(band3, cosm, big),
                        axis=1, keepdims=True)                       # (TB, 1, S)

        include = worst >= jnp.float32(threshold)
        if L > 1:
            # regular_tokens_mask is {0,1}: prod over span == 1 <=> sum == L
            include = include & (msum >= jnp.float32(L) - 0.5)
        include = include & ((col_s + L) <= S)                       # span fits

        # lane-dense row store for this L; no concat, no live columns.
        out_ref[:, L - 1:L, :] = include.astype(out_ref.dtype)


# ------------------------------ Wrapper ------------------------------------ #
def nn_similarity_chunker_include_mask(x, regular_tokens_mask, *,
                                       threshold=0.9, chunk_size_limit=8,
                                       eps=1e-5, batch_block=8,
                                       matmul_dtype=jnp.float32):
    """Returns (B, limit, S) float32; out[b, L-1, s] == 1.0 <=> span [s, s+L)."""
    x = jnp.asarray(x, jnp.float32)
    B, S, H = x.shape
    limit = min(chunk_size_limit, S)
    m3 = jnp.asarray(regular_tokens_mask, jnp.float32).reshape(B, 1, S)

    # Block several batch rows per grid step so small shapes are not pure
    # per-step overhead; pad B up to a multiple of the block.
    TB = min(batch_block, B)
    Bp = pl.cdiv(B, TB) * TB
    if Bp != B:
        x = jnp.pad(x, ((0, Bp - B), (0, 0), (0, 0)))
        m3 = jnp.pad(m3, ((0, Bp - B), (0, 0), (0, 0)))

    kernel = functools.partial(_chunker_kernel, threshold=float(threshold),
                               limit=limit, eps=float(eps),
                               matmul_dtype=matmul_dtype)
    out = pl.pallas_call(
        kernel,
        out_shape=jax.ShapeDtypeStruct((Bp, limit, S), jnp.float32),
        grid=(Bp // TB,),
        in_specs=[
            pl.BlockSpec((TB, S, H), lambda b: (b, 0, 0)),
            pl.BlockSpec((TB, 1, S), lambda b: (b, 0, 0)),
        ],
        out_specs=pl.BlockSpec((TB, limit, S), lambda b: (b, 0, 0)),
        compiler_params=pltpu.CompilerParams(dimension_semantics=("parallel",)),
    )(x, m3)
    return out[:B]


# ---------------------- Host-side epilogue (list glue) --------------------- #
def batch_remove_subsets(batch_L):
    batch_filtered = []
    for L in batch_L:
        filtered = filter(lambda f: not any(set(f) < set(g) for g in L), L)
        batch_filtered.append(list(filtered))
    return batch_filtered


def include_mask_to_chunks(include_mask, seq_length, chunk_size_limit) -> List[List[List[int]]]:
    arr = np.asarray(include_mask) > 0.5           # (B, limit, S)
    B, limit, _ = arr.shape
    limit = min(limit, chunk_size_limit)
    batch_all = [[] for _ in range(B)]
    # Same enumeration order as itertools.combinations(range(S + 1), 2).
    for b in range(B):
        for s in range(seq_length):
            for e in range(s + 1, seq_length + 1):
                L = e - s
                if L > limit:
                    continue
                if arr[b, L - 1, s]:
                    batch_all[b].append(list(range(s, e)))
    return batch_remove_subsets(batch_all)


# --------------------------- NumPy reference -------------------------------- #
def reference_include(x, mask, threshold, limit, eps=1e-5):
    B, S, H = x.shape
    inc = np.zeros((B, limit, S), dtype=bool)
    worst_all = np.full((B, limit, S), -np.inf, dtype=np.float64)
    for s in range(S):
        for e in range(s + 1, S + 1):
            L = e - s
            if L > limit:
                continue
            grp = x[:, s:e, :]                                  # (B, L, H)
            center = grp.mean(axis=1, keepdims=True)            # (B, 1, H)
            dot = (center * grp).sum(-1)                        # (B, L)
            n1 = np.linalg.norm(center, axis=-1)
            n2 = np.linalg.norm(grp, axis=-1)
            sims = dot / np.maximum(n1 * n2, eps)               # torch CosineSimilarity(eps=1e-5)
            worst = sims.min(-1)                                # (B,)
            inc_grp = worst >= threshold
            if L > 1:
                allreg = mask[:, s:e].prod(axis=1) == 1
            else:
                allreg = np.ones(B, dtype=bool)
            inc[:, L - 1, s] = inc_grp & allreg
            worst_all[:, L - 1, s] = worst
    return inc, worst_all


# ------------------------------- Main --------------------------------------- #
if __name__ == "__main__":
    B, S, H = 2, 8, 32
    threshold = 0.9
    chunk_size_limit = 8
    limit = min(chunk_size_limit, S)

    key = jax.random.PRNGKey(0)
    kx, kn1, kn2 = jax.random.split(key, 3)
    x = jax.random.normal(kx, (B, S, H), dtype=jnp.float32)
    # make tokens 2, 3, 4 of batch 0 nearly identical so multi-token chunks appear
    base = x[0, 2]
    x = x.at[0, 3].set(base + 0.01 * jax.random.normal(kn1, (H,), dtype=jnp.float32))
    x = x.at[0, 4].set(base + 0.01 * jax.random.normal(kn2, (H,), dtype=jnp.float32))

    # regular tokens mask: first and last token are "special"
    mask_np = np.ones((B, S), dtype=np.float32)
    mask_np[:, 0] = 0.0
    mask_np[:, -1] = 0.0
    mask = jnp.asarray(mask_np)

    inc = nn_similarity_chunker_include_mask(
        x, mask, threshold=threshold, chunk_size_limit=chunk_size_limit)
    inc = jax.block_until_ready(inc)

    got = np.asarray(inc) > 0.5
    ref_inc, ref_worst = reference_include(np.asarray(x), mask_np, threshold, limit)
    # Approx-reciprocal (EUP) numerics: allow decisions to differ only where the
    # reference worst-similarity is within a tiny band of the threshold.
    near_thr = np.abs(ref_worst - threshold) < 2e-3
    assert np.all((got == ref_inc) | near_thr), "include mask mismatch vs reference"

    chunks = include_mask_to_chunks(inc, S, chunk_size_limit)
    assert len(chunks) == B and all(isinstance(c, list) for c in chunks)
    # sanity: the near-identical tokens 2..4 of batch 0 form a multi-token chunk
    assert any(len(g) > 1 for g in chunks[0])

    print("KERNEL_OK")
</pallas_src>

<mosaic_0001>
module attributes {stable_mosaic.version = 11 : i64} {
  func.func @_chunker_kernel(%arg0: i32, %arg1: memref<2x8x32xf32, #tpu.memory_space<vmem>>, %arg2: memref<2x1x8xf32, #tpu.memory_space<vmem>>, %arg3: memref<2x8x8xf32, #tpu.memory_space<vmem>>) attributes {dimension_semantics = [#tpu.dimension_semantics<parallel>], iteration_bounds = array<i64: 1>, scalar_prefetch = 0 : i64, scratch_operands = 0 : i64, tpu.core_type = #tpu.core_type<tc>, window_params = [{transform_indices = @transform_0, window_bounds = array<i64: 2, 8, 32>}, {transform_indices = @transform_1, window_bounds = array<i64: 2, 1, 8>}, {transform_indices = @transform_2, window_bounds = array<i64: 2, 8, 8>}]} {
    %c0 = arith.constant 0 : index
    %c0_0 = arith.constant 0 : index
    %c0_1 = arith.constant 0 : index
    %0 = vector.load %arg1[%c0, %c0_0, %c0_1] : memref<2x8x32xf32, #tpu.memory_space<vmem>>, vector<2x8x32xf32>
    %c0_2 = arith.constant 0 : index
    %c0_3 = arith.constant 0 : index
    %c0_4 = arith.constant 0 : index
    %1 = vector.load %arg2[%c0_2, %c0_3, %c0_4] : memref<2x1x8xf32, #tpu.memory_space<vmem>>, vector<2x1x8xf32>
    "tpu.trace_start"() <{level = 10 : i32, message = "bih,bjh->bij"}> : () -> ()
    %cst = arith.constant dense<0.000000e+00> : vector<2x8x8xf32>
    %2 = tpu.matmul %0, %0, %cst {dimension_numbers = #tpu.dot_dimension_numbers<[2], [2], [1], [1], [0, 0, 0, 1, 1, 1], [0], [0]>} : vector<2x8x32xf32>, vector<2x8x32xf32>, vector<2x8x8xf32> -> vector<2x8x8xf32>
    "tpu.trace_stop"() : () -> ()
    %3 = arith.mulf %0, %0 : vector<2x8x32xf32>
    %cst_5 = arith.constant dense<0.000000e+00> : vector<2x8xf32>
    %4 = vector.multi_reduction <add>, %3, %cst_5 [2] : vector<2x8x32xf32> to vector<2x8xf32>
    %5 = vector.shape_cast %4 : vector<2x8xf32> to vector<2x8x1xf32>
    %6 = math.sqrt %5 : vector<2x8x1xf32>
    %7 = tpu.iota {dimensions = array<i32: 0>} : vector<8x8xi32>
    %8 = tpu.iota {dimensions = array<i32: 1>} : vector<8x8xi32>
    %9 = tpu.iota {dimensions = array<i32: 2>} : vector<1x1x8xi32>
    %10 = arith.cmpi eq, %7, %8 : vector<8x8xi32>
    %11 = vector.shape_cast %10 : vector<8x8xi1> to vector<1x8x8xi1>
    %cst_6 = arith.constant 0.000000e+00 : f32
    %12 = vector.shape_cast %11 : vector<1x8x8xi1> to vector<1x8x8xi1>
    %13 = vector.broadcast %12 : vector<1x8x8xi1> to vector<2x8x8xi1>
    %14 = vector.broadcast %cst_6 : f32 to vector<2x8x8xf32>
    %15 = arith.select %13, %2, %14 : vector<2x8x8xi1>, vector<2x8x8xf32>
    %cst_7 = arith.constant dense<0.000000e+00> : vector<2x8xf32>
    %16 = vector.multi_reduction <add>, %15, %cst_7 [1] : vector<2x8x8xf32> to vector<2x8xf32>
    %17 = vector.shape_cast %16 : vector<2x8xf32> to vector<2x1x8xf32>
    %cst_8 = arith.constant 0.000000e+00 : f32
    %18 = vector.broadcast %cst_8 : f32 to vector<2x1x8xf32>
    %19 = arith.maximumf %17, %18 : vector<2x1x8xf32>
    %20 = math.sqrt %19 : vector<2x1x8xf32>
    %21 = vector.broadcast %20 : vector<2x1x8xf32> to vector<2x8x8xf32>
    %22 = vector.broadcast %6 : vector<2x8x1xf32> to vector<2x8x8xf32>
    %23 = arith.mulf %21, %22 : vector<2x8x8xf32>
    %cst_9 = arith.constant 9.99999974E-6 : f32
    %24 = vector.broadcast %cst_9 : f32 to vector<2x8x8xf32>
    %25 = arith.maximumf %23, %24 : vector<2x8x8xf32>
    %26 = tpu.reciprocal %25 {approx = true} : vector<2x8x8xf32> -> vector<2x8x8xf32>
    %27 = arith.mulf %2, %26 : vector<2x8x8xf32>
    %cst_10 = arith.constant 3.000000e+00 : f32
    %28 = vector.shape_cast %11 : vector<1x8x8xi1> to vector<1x8x8xi1>
    %29 = vector.broadcast %28 : vector<1x8x8xi1> to vector<2x8x8xi1>
    %30 = vector.broadcast %cst_10 : f32 to vector<2x8x8xf32>
    %31 = arith.select %29, %27, %30 : vector<2x8x8xi1>, vector<2x8x8xf32>
    %cst_11 = arith.constant dense<0x7F800000> : vector<2x8xf32>
    %32 = vector.multi_reduction <minimumf>, %31, %cst_11 [1] : vector<2x8x8xf32> to vector<2x8xf32>
    %33 = vector.shape_cast %32 : vector<2x8xf32> to vector<2x1x8xf32>
    %cst_12 = arith.constant 0.899999976 : f32
    %34 = vector.broadcast %cst_12 : f32 to vector<2x1x8xf32>
    %35 = arith.cmpf oge, %33, %34 : vector<2x1x8xf32>
    %c1_i32 = arith.constant 1 : i32
    %36 = vector.broadcast %c1_i32 : i32 to vector<1x1x8xi32>
    %37 = arith.addi %9, %36 : vector<1x1x8xi32>
    %c8_i32 = arith.constant 8 : i32
    %38 = vector.broadcast %c8_i32 : i32 to vector<1x1x8xi32>
    %39 = arith.cmpi sle, %37, %38 : vector<1x1x8xi32>
    %40 = vector.broadcast %39 : vector<1x1x8xi1> to vector<2x1x8xi1>
    %41 = arith.andi %35, %40 : vector<2x1x8xi1>
    %42 = arith.extui %41 : vector<2x1x8xi1> to vector<2x1x8xi32>
    %43 = arith.sitofp %42 : vector<2x1x8xi32> to vector<2x1x8xf32>
    %c0_13 = arith.constant 0 : index
    %c0_14 = arith.constant 0 : index
    %c0_15 = arith.constant 0 : index
    %44 = vector.load %arg3[%c0_13, %c0_14, %c0_15] : memref<2x8x8xf32, #tpu.memory_space<vmem>>, vector<2x1x8xf32>
    tpu.vector_store %arg3[%c0_13, %c0_14, %c0_15], %43 {strides = array<i32>} : memref<2x8x8xf32, #tpu.memory_space<vmem>>, vector<2x1x8xf32>,
    %cst_16 = arith.constant 0.000000e+00 : f32
    %45 = vector.broadcast %cst_16 : f32 to vector<2x8x1xf32>
    %46 = vector.extract_strided_slice %2 {offsets = [0, 0, 1], sizes = [2, 8, 7], strides = [1, 1, 1]} : vector<2x8x8xf32> to vector<2x8x7xf32>
    %47 = tpu.concatenate %46, %45 in 2 : vector<2x8x7xf32>, vector<2x8x1xf32> -> vector<2x8x8xf32>
    %48 = arith.addf %2, %47 : vector<2x8x8xf32>
    %cst_17 = arith.constant 0.000000e+00 : f32
    %49 = vector.broadcast %cst_17 : f32 to vector<2x1x1xf32>
    %50 = vector.extract_strided_slice %1 {offsets = [0, 0, 1], sizes = [2, 1, 7], strides = [1, 1, 1]} : vector<2x1x8xf32> to vector<2x1x7xf32>
    %51 = tpu.concatenate %50, %49 in 2 : vector<2x1x7xf32>, vector<2x1x1xf32> -> vector<2x1x8xf32>
    %52 = arith.addf %1, %51 : vector<2x1x8xf32>
    %c1_i32_18 = arith.constant 1 : i32
    %53 = vector.broadcast %c1_i32_18 : i32 to vector<8x8xi32>
    %54 = arith.addi %8, %53 : vector<8x8xi32>
    %55 = arith.cmpi eq, %7, %54 : vector<8x8xi32>
    %56 = arith.ori %10, %55 : vector<8x8xi1>
    %57 = vector.shape_cast %56 : vector<8x8xi1> to vector<1x8x8xi1>
    %cst_19 = arith.constant 0.000000e+00 : f32
    %58 = vector.shape_cast %57 : vector<1x8x8xi1> to vector<1x8x8xi1>
    %59 = vector.broadcast %58 : vector<1x8x8xi1> to vector<2x8x8xi1>
    %60 = vector.broadcast %cst_19 : f32 to vector<2x8x8xf32>
    %61 = arith.select %59, %48, %60 : vector<2x8x8xi1>, vector<2x8x8xf32>
    %cst_20 = arith.constant dense<0.000000e+00> : vector<2x8xf32>
    %62 = vector.multi_reduction <add>, %61, %cst_20 [1] : vector<2x8x8xf32> to vector<2x8xf32>
    %63 = vector.shape_cast %62 : vector<2x8xf32> to vector<2x1x8xf32>
    %cst_21 = arith.constant 0.000000e+00 : f32
    %64 = vector.broadcast %cst_21 : f32 to vector<2x1x8xf32>
    %65 = arith.maximumf %63, %64 : vector<2x1x8xf32>
    %66 = math.sqrt %65 : vector<2x1x8xf32>
    %67 = vector.broadcast %66 : vector<2x1x8xf32> to vector<2x8x8xf32>
    %68 = vector.broadcast %6 : vector<2x8x1xf32> to vector<2x8x8xf32>
    %69 = arith.mulf %67, %68 : vector<2x8x8xf32>
    %cst_22 = arith.constant 2.000000e-05 : f32
    %70 = vector.broadcast %cst_22 : f32 to vector<2x8x8xf32>
    %71 = arith.maximumf %69, %70 : vector<2x8x8xf32>
    %72 = tpu.reciprocal %71 {approx = true} : vector<2x8x8xf32> -> vector<2x8x8xf32>
    %73 = arith.mulf %48, %72 : vector<2x8x8xf32>
    %cst_23 = arith.constant 3.000000e+00 : f32
    %74 = vector.shape_cast %57 : vector<1x8x8xi1> to vector<1x8x8xi1>
    %75 = vector.broadcast %74 : vector<1x8x8xi1> to vector<2x8x8xi1>
    %76 = vector.broadcast %cst_23 : f32 to vector<2x8x8xf32>
    %77 = arith.select %75, %73, %76 : vector<2x8x8xi1>, vector<2x8x8xf32>
    %cst_24 = arith.constant dense<0x7F800000> : vector<2x8xf32>
    %78 = vector.multi_reduction <minimumf>, %77, %cst_24 [1] : vector<2x8x8xf32> to vector<2x8xf32>
    %79 = vector.shape_cast %78 : vector<2x8xf32> to vector<2x1x8xf32>
    %cst_25 = arith.constant 0.899999976 : f32
    %80 = vector.broadcast %cst_25 : f32 to vector<2x1x8xf32>
    %81 = arith.cmpf oge, %79, %80 : vector<2x1x8xf32>
    %cst_26 = arith.constant 2.000000e+00 : f32
    %cst_27 = arith.constant 5.000000e-01 : f32
    %82 = arith.subf %cst_26, %cst_27 : f32
    %83 = vector.broadcast %82 : f32 to vector<2x1x8xf32>
    %84 = arith.cmpf oge, %52, %83 : vector<2x1x8xf32>
    %85 = arith.andi %81, %84 : vector<2x1x8xi1>
    %c2_i32 = arith.constant 2 : i32
    %86 = vector.broadcast %c2_i32 : i32 to vector<1x1x8xi32>
    %87 = arith.addi %9, %86 : vector<1x1x8xi32>
    %c8_i32_28 = arith.constant 8 : i32
    %88 = vector.broadcast %c8_i32_28 : i32 to vector<1x1x8xi32>
    %89 = arith.cmpi sle, %87, %88 : vector<1x1x8xi32>
    %90 = vector.broadcast %89 : vector<1x1x8xi1> to vector<2x1x8xi1>
    %91 = arith.andi %85, %90 : vector<2x1x8xi1>
    %92 = arith.extui %91 : vector<2x1x8xi1> to vector<2x1x8xi32>
    %93 = arith.sitofp %92 : vector<2x1x8xi32> to vector<2x1x8xf32>
    %c0_29 = arith.constant 0 : index
    %c1 = arith.constant 1 : index
    %c0_30 = arith.constant 0 : index
    %94 = vector.load %arg3[%c0_29, %c1, %c0_30] : memref<2x8x8xf32, #tpu.memory_space<vmem>>, vector<2x1x8xf32>
    tpu.vector_store %arg3[%c0_29, %c1, %c0_30], %93 {strides = array<i32>} : memref<2x8x8xf32, #tpu.memory_space<vmem>>, vector<2x1x8xf32>,
    %cst_31 = arith.constant 0.000000e+00 : f32
    %95 = vector.broadcast %cst_31 : f32 to vector<2x8x2xf32>
    %96 = vector.extract_strided_slice %2 {offsets = [0, 0, 2], sizes = [2, 8, 6], strides = [1, 1, 1]} : vector<2x8x8xf32> to vector<2x8x6xf32>
    %97 = tpu.concatenate %96, %95 in 2 : vector<2x8x6xf32>, vector<2x8x2xf32> -> vector<2x8x8xf32>
    %98 = arith.addf %48, %97 : vector<2x8x8xf32>
    %cst_32 = arith.constant 0.000000e+00 : f32
    %99 = vector.broadcast %cst_32 : f32 to vector<2x1x2xf32>
    %100 = vector.extract_strided_slice %1 {offsets = [0, 0, 2], sizes = [2, 1, 6], strides = [1, 1, 1]} : vector<2x1x8xf32> to vector<2x1x6xf32>
    %101 = tpu.concatenate %100, %99 in 2 : vector<2x1x6xf32>, vector<2x1x2xf32> -> vector<2x1x8xf32>
    %102 = arith.addf %52, %101 : vector<2x1x8xf32>
    %c2_i32_33 = arith.constant 2 : i32
    %103 = vector.broadcast %c2_i32_33 : i32 to vector<8x8xi32>
    %104 = arith.addi %8, %103 : vector<8x8xi32>
    %105 = arith.cmpi eq, %7, %104 : vector<8x8xi32>
    %106 = arith.ori %56, %105 : vector<8x8xi1>
    %107 = vector.shape_cast %106 : vector<8x8xi1> to vector<1x8x8xi1>
    %cst_34 = arith.constant 0.000000e+00 : f32
    %108 = vector.shape_cast %107 : vector<1x8x8xi1> to vector<1x8x8xi1>
    %109 = vector.broadcast %108 : vector<1x8x8xi1> to vector<2x8x8xi1>
    %110 = vector.broadcast %cst_34 : f32 to vector<2x8x8xf32>
    %111 = arith.select %109, %98, %110 : vector<2x8x8xi1>, vector<2x8x8xf32>
    %cst_35 = arith.constant dense<0.000000e+00> : vector<2x8xf32>
    %112 = vector.multi_reduction <add>, %111, %cst_35 [1] : vector<2x8x8xf32> to vector<2x8xf32>
    %113 = vector.shape_cast %112 : vector<2x8xf32> to vector<2x1x8xf32>
    %cst_36 = arith.constant 0.000000e+00 : f32
    %114 = vector.broadcast %cst_36 : f32 to vector<2x1x8xf32>
    %115 = arith.maximumf %113, %114 : vector<2x1x8xf32>
    %116 = math.sqrt %115 : vector<2x1x8xf32>
    %117 = vector.broadcast %116 : vector<2x1x8xf32> to vector<2x8x8xf32>
    %118 = vector.broadcast %6 : vector<2x8x1xf32> to vector<2x8x8xf32>
    %119 = arith.mulf %117, %118 : vector<2x8x8xf32>
    %cst_37 = arith.constant 3.000000e-05 : f32
    %120 = vector.broadcast %cst_37 : f32 to vector<2x8x8xf32>
    %121 = arith.maximumf %119, %120 : vector<2x8x8xf32>
    %122 = tpu.reciprocal %121 {approx = true} : vector<2x8x8xf32> -> vector<2x8x8xf32>
    %123 = arith.mulf %98, %122 : vector<2x8x8xf32>
    %cst_38 = arith.constant 3.000000e+00 : f32
    %124 = vector.shape_cast %107 : vector<1x8x8xi1> to vector<1x8x8xi1>
    %125 = vector.broadcast %124 : vector<1x8x8xi1> to vector<2x8x8xi1>
    %126 = vector.broadcast %cst_38 : f32 to vector<2x8x8xf32>
    %127 = arith.select %125, %123, %126 : vector<2x8x8xi1>, vector<2x8x8xf32>
    %cst_39 = arith.constant dense<0x7F800000> : vector<2x8xf32>
    %128 = vector.multi_reduction <minimumf>, %127, %cst_39 [1] : vector<2x8x8xf32> to vector<2x8xf32>
    %129 = vector.shape_cast %128 : vector<2x8xf32> to vector<2x1x8xf32>
    %cst_40 = arith.constant 0.899999976 : f32
    %130 = vector.broadcast %cst_40 : f32 to vector<2x1x8xf32>
    %131 = arith.cmpf oge, %129, %130 : vector<2x1x8xf32>
    %cst_41 = arith.constant 3.000000e+00 : f32
    %cst_42 = arith.constant 5.000000e-01 : f32
    %132 = arith.subf %cst_41, %cst_42 : f32
    %133 = vector.broadcast %132 : f32 to vector<2x1x8xf32>
    %134 = arith.cmpf oge, %102, %133 : vector<2x1x8xf32>
    %135 = arith.andi %131, %134 : vector<2x1x8xi1>
    %c3_i32 = arith.constant 3 : i32
    %136 = vector.broadcast %c3_i32 : i32 to vector<1x1x8xi32>
    %137 = arith.addi %9, %136 : vector<1x1x8xi32>
    %c8_i32_43 = arith.constant 8 : i32
    %138 = vector.broadcast %c8_i32_43 : i32 to vector<1x1x8xi32>
    %139 = arith.cmpi sle, %137, %138 : vector<1x1x8xi32>
    %140 = vector.broadcast %139 : vector<1x1x8xi1> to vector<2x1x8xi1>
    %141 = arith.andi %135, %140 : vector<2x1x8xi1>
    %142 = arith.extui %141 : vector<2x1x8xi1> to vector<2x1x8xi32>
    %143 = arith.sitofp %142 : vector<2x1x8xi32> to vector<2x1x8xf32>
    %c0_44 = arith.constant 0 : index
    %c2 = arith.constant 2 : index
    %c0_45 = arith.constant 0 : index
    %144 = vector.load %arg3[%c0_44, %c2, %c0_45] : memref<2x8x8xf32, #tpu.memory_space<vmem>>, vector<2x1x8xf32>
    tpu.vector_store %arg3[%c0_44, %c2, %c0_45], %143 {strides = array<i32>} : memref<2x8x8xf32, #tpu.memory_space<vmem>>, vector<2x1x8xf32>,
    %cst_46 = arith.constant 0.000000e+00 : f32
    %145 = vector.broadcast %cst_46 : f32 to vector<2x8x3xf32>
    %146 = vector.extract_strided_slice %2 {offsets = [0, 0, 3], sizes = [2, 8, 5], strides = [1, 1, 1]} : vector<2x8x8xf32> to vector<2x8x5xf32>
    %147 = tpu.concatenate %146, %145 in 2 : vector<2x8x5xf32>, vector<2x8x3xf32> -> vector<2x8x8xf32>
    %148 = arith.addf %98, %147 : vector<2x8x8xf32>
    %cst_47 = arith.constant 0.000000e+00 : f32
    %149 = vector.broadcast %cst_47 : f32 to vector<2x1x3xf32>
    %150 = vector.extract_strided_slice %1 {offsets = [0, 0, 3], sizes = [2, 1, 5], strides = [1, 1, 1]} : vector<2x1x8xf32> to vector<2x1x5xf32>
    %151 = tpu.concatenate %150, %149 in 2 : vector<2x1x5xf32>, vector<2x1x3xf32> -> vector<2x1x8xf32>
    %152 = arith.addf %102, %151 : vector<2x1x8xf32>
    %c3_i32_48 = arith.constant 3 : i32
    %153 = vector.broadcast %c3_i32_48 : i32 to vector<8x8xi32>
    %154 = arith.addi %8, %153 : vector<8x8xi32>
    %155 = arith.cmpi eq, %7, %154 : vector<8x8xi32>
    %156 = arith.ori %106, %155 : vector<8x8xi1>
    %157 = vector.shape_cast %156 : vector<8x8xi1> to vector<1x8x8xi1>
    %cst_49 = arith.constant 0.000000e+00 : f32
    %158 = vector.shape_cast %157 : vector<1x8x8xi1> to vector<1x8x8xi1>
    %159 = vector.broadcast %158 : vector<1x8x8xi1> to vector<2x8x8xi1>
    %160 = vector.broadcast %cst_49 : f32 to vector<2x8x8xf32>
    %161 = arith.select %159, %148, %160 : vector<2x8x8xi1>, vector<2x8x8xf32>
    %cst_50 = arith.constant dense<0.000000e+00> : vector<2x8xf32>
    %162 = vector.multi_reduction <add>, %161, %cst_50 [1] : vector<2x8x8xf32> to vector<2x8xf32>
    %163 = vector.shape_cast %162 : vector<2x8xf32> to vector<2x1x8xf32>
    %cst_51 = arith.constant 0.000000e+00 : f32
    %164 = vector.broadcast %cst_51 : f32 to vector<2x1x8xf32>
    %165 = arith.maximumf %163, %164 : vector<2x1x8xf32>
    %166 = math.sqrt %165 : vector<2x1x8xf32>
    %167 = vector.broadcast %166 : vector<2x1x8xf32> to vector<2x8x8xf32>
    %168 = vector.broadcast %6 : vector<2x8x1xf32> to vector<2x8x8xf32>
    %169 = arith.mulf %167, %168 : vector<2x8x8xf32>
    %cst_52 = arith.constant 4.000000e-05 : f32
    %170 = vector.broadcast %cst_52 : f32 to vector<2x8x8xf32>
    %171 = arith.maximumf %169, %170 : vector<2x8x8xf32>
    %172 = tpu.reciprocal %171 {approx = true} : vector<2x8x8xf32> -> vector<2x8x8xf32>
    %173 = arith.mulf %148, %172 : vector<2x8x8xf32>
    %cst_53 = arith.constant 3.000000e+00 : f32
    %174 = vector.shape_cast %157 : vector<1x8x8xi1> to vector<1x8x8xi1>
    %175 = vector.broadcast %174 : vector<1x8x8xi1> to vector<2x8x8xi1>
    %176 = vector.broadcast %cst_53 : f32 to vector<2x8x8xf32>
    %177 = arith.select %175, %173, %176 : vector<2x8x8xi1>, vector<2x8x8xf32>
    %cst_54 = arith.constant dense<0x7F800000> : vector<2x8xf32>
    %178 = vector.multi_reduction <minimumf>, %177, %cst_54 [1] : vector<2x8x8xf32> to vector<2x8xf32>
    %179 = vector.shape_cast %178 : vector<2x8xf32> to vector<2x1x8xf32>
    %cst_55 = arith.constant 0.899999976 : f32
    %180 = vector.broadcast %cst_55 : f32 to vector<2x1x8xf32>
    %181 = arith.cmpf oge, %179, %180 : vector<2x1x8xf32>
    %cst_56 = arith.constant 4.000000e+00 : f32
    %cst_57 = arith.constant 5.000000e-01 : f32
    %182 = arith.subf %cst_56, %cst_57 : f32
    %183 = vector.broadcast %182 : f32 to vector<2x1x8xf32>
    %184 = arith.cmpf oge, %152, %183 : vector<2x1x8xf32>
    %185 = arith.andi %181, %184 : vector<2x1x8xi1>
    %c4_i32 = arith.constant 4 : i32
    %186 = vector.broadcast %c4_i32 : i32 to vector<1x1x8xi32>
    %187 = arith.addi %9, %186 : vector<1x1x8xi32>
    %c8_i32_58 = arith.constant 8 : i32
    %188 = vector.broadcast %c8_i32_58 : i32 to vector<1x1x8xi32>
    %189 = arith.cmpi sle, %187, %188 : vector<1x1x8xi32>
    %190 = vector.broadcast %189 : vector<1x1x8xi1> to vector<2x1x8xi1>
    %191 = arith.andi %185, %190 : vector<2x1x8xi1>
    %192 = arith.extui %191 : vector<2x1x8xi1> to vector<2x1x8xi32>
    %193 = arith.sitofp %192 : vector<2x1x8xi32> to vector<2x1x8xf32>
    %c0_59 = arith.constant 0 : index
    %c3 = arith.constant 3 : index
    %c0_60 = arith.constant 0 : index
    %194 = vector.load %arg3[%c0_59, %c3, %c0_60] : memref<2x8x8xf32, #tpu.memory_space<vmem>>, vector<2x1x8xf32>
    tpu.vector_store %arg3[%c0_59, %c3, %c0_60], %193 {strides = array<i32>} : memref<2x8x8xf32, #tpu.memory_space<vmem>>, vector<2x1x8xf32>,
    %cst_61 = arith.constant 0.000000e+00 : f32
    %195 = vector.broadcast %cst_61 : f32 to vector<2x8x4xf32>
    %196 = vector.extract_strided_slice %2 {offsets = [0, 0, 4], sizes = [2, 8, 4], strides = [1, 1, 1]} : vector<2x8x8xf32> to vector<2x8x4xf32>
    %197 = tpu.concatenate %196, %195 in 2 : vector<2x8x4xf32>, vector<2x8x4xf32> -> vector<2x8x8xf32>
    %198 = arith.addf %148, %197 : vector<2x8x8xf32>
    %cst_62 = arith.constant 0.000000e+00 : f32
    %199 = vector.broadcast %cst_62 : f32 to vector<2x1x4xf32>
    %200 = vector.extract_strided_slice %1 {offsets = [0, 0, 4], sizes = [2, 1, 4], strides = [1, 1, 1]} : vector<2x1x8xf32> to vector<2x1x4xf32>
    %201 = tpu.concatenate %200, %199 in 2 : vector<2x1x4xf32>, vector<2x1x4xf32> -> vector<2x1x8xf32>
    %202 = arith.addf %152, %201 : vector<2x1x8xf32>
    %c4_i32_63 = arith.constant 4 : i32
    %203 = vector.broadcast %c4_i32_63 : i32 to vector<8x8xi32>
    %204 = arith.addi %8, %203 : vector<8x8xi32>
    %205 = arith.cmpi eq, %7, %204 : vector<8x8xi32>
    %206 = arith.ori %156, %205 : vector<8x8xi1>
    %207 = vector.shape_cast %206 : vector<8x8xi1> to vector<1x8x8xi1>
    %cst_64 = arith.constant 0.000000e+00 : f32
    %208 = vector.shape_cast %207 : vector<1x8x8xi1> to vector<1x8x8xi1>
    %209 = vector.broadcast %208 : vector<1x8x8xi1> to vector<2x8x8xi1>
    %210 = vector.broadcast %cst_64 : f32 to vector<2x8x8xf32>
    %211 = arith.select %209, %198, %210 : vector<2x8x8xi1>, vector<2x8x8xf32>
    %cst_65 = arith.constant dense<0.000000e+00> : vector<2x8xf32>
    %212 = vector.multi_reduction <add>, %211, %cst_65 [1] : vector<2x8x8xf32> to vector<2x8xf32>
    %213 = vector.shape_cast %212 : vector<2x8xf32> to vector<2x1x8xf32>
    %cst_66 = arith.constant 0.000000e+00 : f32
    %214 = vector.broadcast %cst_66 : f32 to vector<2x1x8xf32>
    %215 = arith.maximumf %213, %214 : vector<2x1x8xf32>
    %216 = math.sqrt %215 : vector<2x1x8xf32>
    %217 = vector.broadcast %216 : vector<2x1x8xf32> to vector<2x8x8xf32>
    %218 = vector.broadcast %6 : vector<2x8x1xf32> to vector<2x8x8xf32>
    %219 = arith.mulf %217, %218 : vector<2x8x8xf32>
    %cst_67 = arith.constant 5.000000e-05 : f32
    %220 = vector.broadcast %cst_67 : f32 to vector<2x8x8xf32>
    %221 = arith.maximumf %219, %220 : vector<2x8x8xf32>
    %222 = tpu.reciprocal %221 {approx = true} : vector<2x8x8xf32> -> vector<2x8x8xf32>
    %223 = arith.mulf %198, %222 : vector<2x8x8xf32>
    %cst_68 = arith.constant 3.000000e+00 : f32
    %224 = vector.shape_cast %207 : vector<1x8x8xi1> to vector<1x8x8xi1>
    %225 = vector.broadcast %224 : vector<1x8x8xi1> to vector<2x8x8xi1>
    %226 = vector.broadcast %cst_68 : f32 to vector<2x8x8xf32>
    %227 = arith.select %225, %223, %226 : vector<2x8x8xi1>, vector<2x8x8xf32>
    %cst_69 = arith.constant dense<0x7F800000> : vector<2x8xf32>
    %228 = vector.multi_reduction <minimumf>, %227, %cst_69 [1] : vector<2x8x8xf32> to vector<2x8xf32>
    %229 = vector.shape_cast %228 : vector<2x8xf32> to vector<2x1x8xf32>
    %cst_70 = arith.constant 0.899999976 : f32
    %230 = vector.broadcast %cst_70 : f32 to vector<2x1x8xf32>
    %231 = arith.cmpf oge, %229, %230 : vector<2x1x8xf32>
    %cst_71 = arith.constant 5.000000e+00 : f32
    %cst_72 = arith.constant 5.000000e-01 : f32
    %232 = arith.subf %cst_71, %cst_72 : f32
    %233 = vector.broadcast %232 : f32 to vector<2x1x8xf32>
    %234 = arith.cmpf oge, %202, %233 : vector<2x1x8xf32>
    %235 = arith.andi %231, %234 : vector<2x1x8xi1>
    %c5_i32 = arith.constant 5 : i32
    %236 = vector.broadcast %c5_i32 : i32 to vector<1x1x8xi32>
    %237 = arith.addi %9, %236 : vector<1x1x8xi32>
    %c8_i32_73 = arith.constant 8 : i32
    %238 = vector.broadcast %c8_i32_73 : i32 to vector<1x1x8xi32>
    %239 = arith.cmpi sle, %237, %238 : vector<1x1x8xi32>
    %240 = vector.broadcast %239 : vector<1x1x8xi1> to vector<2x1x8xi1>
    %241 = arith.andi %235, %240 : vector<2x1x8xi1>
    %242 = arith.extui %241 : vector<2x1x8xi1> to vector<2x1x8xi32>
    %243 = arith.sitofp %242 : vector<2x1x8xi32> to vector<2x1x8xf32>
    %c0_74 = arith.constant 0 : index
    %c4 = arith.constant 4 : index
    %c0_75 = arith.constant 0 : index
    %244 = vector.load %arg3[%c0_74, %c4, %c0_75] : memref<2x8x8xf32, #tpu.memory_space<vmem>>, vector<2x1x8xf32>
    tpu.vector_store %arg3[%c0_74, %c4, %c0_75], %243 {strides = array<i32>} : memref<2x8x8xf32, #tpu.memory_space<vmem>>, vector<2x1x8xf32>,
    %cst_76 = arith.constant 0.000000e+00 : f32
    %245 = vector.broadcast %cst_76 : f32 to vector<2x8x5xf32>
    %246 = vector.extract_strided_slice %2 {offsets = [0, 0, 5], sizes = [2, 8, 3], strides = [1, 1, 1]} : vector<2x8x8xf32> to vector<2x8x3xf32>
    %247 = tpu.concatenate %246, %245 in 2 : vector<2x8x3xf32>, vector<2x8x5xf32> -> vector<2x8x8xf32>
    %248 = arith.addf %198, %247 : vector<2x8x8xf32>
    %cst_77 = arith.constant 0.000000e+00 : f32
    %249 = vector.broadcast %cst_77 : f32 to vector<2x1x5xf32>
    %250 = vector.extract_strided_slice %1 {offsets = [0, 0, 5], sizes = [2, 1, 3], strides = [1, 1, 1]} : vector<2x1x8xf32> to vector<2x1x3xf32>
    %251 = tpu.concatenate %250, %249 in 2 : vector<2x1x3xf32>, vector<2x1x5xf32> -> vector<2x1x8xf32>
    %252 = arith.addf %202, %251 : vector<2x1x8xf32>
    %c5_i32_78 = arith.constant 5 : i32
    %253 = vector.broadcast %c5_i32_78 : i32 to vector<8x8xi32>
    %254 = arith.addi %8, %253 : vector<8x8xi32>
    %255 = arith.cmpi eq, %7, %254 : vector<8x8xi32>
    %256 = arith.ori %206, %255 : vector<8x8xi1>
    %257 = vector.shape_cast %256 : vector<8x8xi1> to vector<1x8x8xi1>
    %cst_79 = arith.constant 0.000000e+00 : f32
    %258 = vector.shape_cast %257 : vector<1x8x8xi1> to vector<1x8x8xi1>
    %259 = vector.broadcast %258 : vector<1x8x8xi1> to vector<2x8x8xi1>
    %260 = vector.broadcast %cst_79 : f32 to vector<2x8x8xf32>
    %261 = arith.select %259, %248, %260 : vector<2x8x8xi1>, vector<2x8x8xf32>
    %cst_80 = arith.constant dense<0.000000e+00> : vector<2x8xf32>
    %262 = vector.multi_reduction <add>, %261, %cst_80 [1] : vector<2x8x8xf32> to vector<2x8xf32>
    %263 = vector.shape_cast %262 : vector<2x8xf32> to vector<2x1x8xf32>
    %cst_81 = arith.constant 0.000000e+00 : f32
    %264 = vector.broadcast %cst_81 : f32 to vector<2x1x8xf32>
    %265 = arith.maximumf %263, %264 : vector<2x1x8xf32>
    %266 = math.sqrt %265 : vector<2x1x8xf32>
    %267 = vector.broadcast %266 : vector<2x1x8xf32> to vector<2x8x8xf32>
    %268 = vector.broadcast %6 : vector<2x8x1xf32> to vector<2x8x8xf32>
    %269 = arith.mulf %267, %268 : vector<2x8x8xf32>
    %cst_82 = arith.constant 6.000000e-05 : f32
    %270 = vector.broadcast %cst_82 : f32 to vector<2x8x8xf32>
    %271 = arith.maximumf %269, %270 : vector<2x8x8xf32>
    %272 = tpu.reciprocal %271 {approx = true} : vector<2x8x8xf32> -> vector<2x8x8xf32>
    %273 = arith.mulf %248, %272 : vector<2x8x8xf32>
    %cst_83 = arith.constant 3.000000e+00 : f32
    %274 = vector.shape_cast %257 : vector<1x8x8xi1> to vector<1x8x8xi1>
    %275 = vector.broadcast %274 : vector<1x8x8xi1> to vector<2x8x8xi1>
    %276 = vector.broadcast %cst_83 : f32 to vector<2x8x8xf32>
    %277 = arith.select %275, %273, %276 : vector<2x8x8xi1>, vector<2x8x8xf32>
    %cst_84 = arith.constant dense<0x7F800000> : vector<2x8xf32>
    %278 = vector.multi_reduction <minimumf>, %277, %cst_84 [1] : vector<2x8x8xf32> to vector<2x8xf32>
    %279 = vector.shape_cast %278 : vector<2x8xf32> to vector<2x1x8xf32>
    %cst_85 = arith.constant 0.899999976 : f32
    %280 = vector.broadcast %cst_85 : f32 to vector<2x1x8xf32>
    %281 = arith.cmpf oge, %279, %280 : vector<2x1x8xf32>
    %cst_86 = arith.constant 6.000000e+00 : f32
    %cst_87 = arith.constant 5.000000e-01 : f32
    %282 = arith.subf %cst_86, %cst_87 : f32
    %283 = vector.broadcast %282 : f32 to vector<2x1x8xf32>
    %284 = arith.cmpf oge, %252, %283 : vector<2x1x8xf32>
    %285 = arith.andi %281, %284 : vector<2x1x8xi1>
    %c6_i32 = arith.constant 6 : i32
    %286 = vector.broadcast %c6_i32 : i32 to vector<1x1x8xi32>
    %287 = arith.addi %9, %286 : vector<1x1x8xi32>
    %c8_i32_88 = arith.constant 8 : i32
    %288 = vector.broadcast %c8_i32_88 : i32 to vector<1x1x8xi32>
    %289 = arith.cmpi sle, %287, %288 : vector<1x1x8xi32>
    %290 = vector.broadcast %289 : vector<1x1x8xi1> to vector<2x1x8xi1>
    %291 = arith.andi %285, %290 : vector<2x1x8xi1>
    %292 = arith.extui %291 : vector<2x1x8xi1> to vector<2x1x8xi32>
    %293 = arith.sitofp %292 : vector<2x1x8xi32> to vector<2x1x8xf32>
    %c0_89 = arith.constant 0 : index
    %c5 = arith.constant 5 : index
    %c0_90 = arith.constant 0 : index
    %294 = vector.load %arg3[%c0_89, %c5, %c0_90] : memref<2x8x8xf32, #tpu.memory_space<vmem>>, vector<2x1x8xf32>
    tpu.vector_store %arg3[%c0_89, %c5, %c0_90], %293 {strides = array<i32>} : memref<2x8x8xf32, #tpu.memory_space<vmem>>, vector<2x1x8xf32>,
    %cst_91 = arith.constant 0.000000e+00 : f32
    %295 = vector.broadcast %cst_91 : f32 to vector<2x8x6xf32>
    %296 = vector.extract_strided_slice %2 {offsets = [0, 0, 6], sizes = [2, 8, 2], strides = [1, 1, 1]} : vector<2x8x8xf32> to vector<2x8x2xf32>
    %297 = tpu.concatenate %296, %295 in 2 : vector<2x8x2xf32>, vector<2x8x6xf32> -> vector<2x8x8xf32>
    %298 = arith.addf %248, %297 : vector<2x8x8xf32>
    %cst_92 = arith.constant 0.000000e+00 : f32
    %299 = vector.broadcast %cst_92 : f32 to vector<2x1x6xf32>
    %300 = vector.extract_strided_slice %1 {offsets = [0, 0, 6], sizes = [2, 1, 2], strides = [1, 1, 1]} : vector<2x1x8xf32> to vector<2x1x2xf32>
    %301 = tpu.concatenate %300, %299 in 2 : vector<2x1x2xf32>, vector<2x1x6xf32> -> vector<2x1x8xf32>
    %302 = arith.addf %252, %301 : vector<2x1x8xf32>
    %c6_i32_93 = arith.constant 6 : i32
    %303 = vector.broadcast %c6_i32_93 : i32 to vector<8x8xi32>
    %304 = arith.addi %8, %303 : vector<8x8xi32>
    %305 = arith.cmpi eq, %7, %304 : vector<8x8xi32>
    %306 = arith.ori %256, %305 : vector<8x8xi1>
    %307 = vector.shape_cast %306 : vector<8x8xi1> to vector<1x8x8xi1>
    %cst_94 = arith.constant 0.000000e+00 : f32
    %308 = vector.shape_cast %307 : vector<1x8x8xi1> to vector<1x8x8xi1>
    %309 = vector.broadcast %308 : vector<1x8x8xi1> to vector<2x8x8xi1>
    %310 = vector.broadcast %cst_94 : f32 to vector<2x8x8xf32>
    %311 = arith.select %309, %298, %310 : vector<2x8x8xi1>, vector<2x8x8xf32>
    %cst_95 = arith.constant dense<0.000000e+00> : vector<2x8xf32>
    %312 = vector.multi_reduction <add>, %311, %cst_95 [1] : vector<2x8x8xf32> to vector<2x8xf32>
    %313 = vector.shape_cast %312 : vector<2x8xf32> to vector<2x1x8xf32>
    %cst_96 = arith.constant 0.000000e+00 : f32
    %314 = vector.broadcast %cst_96 : f32 to vector<2x1x8xf32>
    %315 = arith.maximumf %313, %314 : vector<2x1x8xf32>
    %316 = math.sqrt %315 : vector<2x1x8xf32>
    %317 = vector.broadcast %316 : vector<2x1x8xf32> to vector<2x8x8xf32>
    %318 = vector.broadcast %6 : vector<2x8x1xf32> to vector<2x8x8xf32>
    %319 = arith.mulf %317, %318 : vector<2x8x8xf32>
    %cst_97 = arith.constant 7.000000e-05 : f32
    %320 = vector.broadcast %cst_97 : f32 to vector<2x8x8xf32>
    %321 = arith.maximumf %319, %320 : vector<2x8x8xf32>
    %322 = tpu.reciprocal %321 {approx = true} : vector<2x8x8xf32> -> vector<2x8x8xf32>
    %323 = arith.mulf %298, %322 : vector<2x8x8xf32>
    %cst_98 = arith.constant 3.000000e+00 : f32
    %324 = vector.shape_cast %307 : vector<1x8x8xi1> to vector<1x8x8xi1>
    %325 = vector.broadcast %324 : vector<1x8x8xi1> to vector<2x8x8xi1>
    %326 = vector.broadcast %cst_98 : f32 to vector<2x8x8xf32>
    %327 = arith.select %325, %323, %326 : vector<2x8x8xi1>, vector<2x8x8xf32>
    %cst_99 = arith.constant dense<0x7F800000> : vector<2x8xf32>
    %328 = vector.multi_reduction <minimumf>, %327, %cst_99 [1] : vector<2x8x8xf32> to vector<2x8xf32>
    %329 = vector.shape_cast %328 : vector<2x8xf32> to vector<2x1x8xf32>
    %cst_100 = arith.constant 0.899999976 : f32
    %330 = vector.broadcast %cst_100 : f32 to vector<2x1x8xf32>
    %331 = arith.cmpf oge, %329, %330 : vector<2x1x8xf32>
    %cst_101 = arith.constant 7.000000e+00 : f32
    %cst_102 = arith.constant 5.000000e-01 : f32
    %332 = arith.subf %cst_101, %cst_102 : f32
    %333 = vector.broadcast %332 : f32 to vector<2x1x8xf32>
    %334 = arith.cmpf oge, %302, %333 : vector<2x1x8xf32>
    %335 = arith.andi %331, %334 : vector<2x1x8xi1>
    %c7_i32 = arith.constant 7 : i32
    %336 = vector.broadcast %c7_i32 : i32 to vector<1x1x8xi32>
    %337 = arith.addi %9, %336 : vector<1x1x8xi32>
    %c8_i32_103 = arith.constant 8 : i32
    %338 = vector.broadcast %c8_i32_103 : i32 to vector<1x1x8xi32>
    %339 = arith.cmpi sle, %337, %338 : vector<1x1x8xi32>
    %340 = vector.broadcast %339 : vector<1x1x8xi1> to vector<2x1x8xi1>
    %341 = arith.andi %335, %340 : vector<2x1x8xi1>
    %342 = arith.extui %341 : vector<2x1x8xi1> to vector<2x1x8xi32>
    %343 = arith.sitofp %342 : vector<2x1x8xi32> to vector<2x1x8xf32>
    %c0_104 = arith.constant 0 : index
    %c6 = arith.constant 6 : index
    %c0_105 = arith.constant 0 : index
    %344 = vector.load %arg3[%c0_104, %c6, %c0_105] : memref<2x8x8xf32, #tpu.memory_space<vmem>>, vector<2x1x8xf32>
    tpu.vector_store %arg3[%c0_104, %c6, %c0_105], %343 {strides = array<i32>} : memref<2x8x8xf32, #tpu.memory_space<vmem>>, vector<2x1x8xf32>,
    %cst_106 = arith.constant 0.000000e+00 : f32
    %345 = vector.broadcast %cst_106 : f32 to vector<2x8x7xf32>
    %346 = vector.extract_strided_slice %2 {offsets = [0, 0, 7], sizes = [2, 8, 1], strides = [1, 1, 1]} : vector<2x8x8xf32> to vector<2x8x1xf32>
    %347 = tpu.concatenate %346, %345 in 2 : vector<2x8x1xf32>, vector<2x8x7xf32> -> vector<2x8x8xf32>
    %348 = arith.addf %298, %347 : vector<2x8x8xf32>
    %cst_107 = arith.constant 0.000000e+00 : f32
    %349 = vector.broadcast %cst_107 : f32 to vector<2x1x7xf32>
    %350 = vector.extract_strided_slice %1 {offsets = [0, 0, 7], sizes = [2, 1, 1], strides = [1, 1, 1]} : vector<2x1x8xf32> to vector<2x1x1xf32>
    %351 = tpu.concatenate %350, %349 in 2 : vector<2x1x1xf32>, vector<2x1x7xf32> -> vector<2x1x8xf32>
    %352 = arith.addf %302, %351 : vector<2x1x8xf32>
    %c7_i32_108 = arith.constant 7 : i32
    %353 = vector.broadcast %c7_i32_108 : i32 to vector<8x8xi32>
    %354 = arith.addi %8, %353 : vector<8x8xi32>
    %355 = arith.cmpi eq, %7, %354 : vector<8x8xi32>
    %356 = arith.ori %306, %355 : vector<8x8xi1>
    %357 = vector.shape_cast %356 : vector<8x8xi1> to vector<1x8x8xi1>
    %cst_109 = arith.constant 0.000000e+00 : f32
    %358 = vector.shape_cast %357 : vector<1x8x8xi1> to vector<1x8x8xi1>
    %359 = vector.broadcast %358 : vector<1x8x8xi1> to vector<2x8x8xi1>
    %360 = vector.broadcast %cst_109 : f32 to vector<2x8x8xf32>
    %361 = arith.select %359, %348, %360 : vector<2x8x8xi1>, vector<2x8x8xf32>
    %cst_110 = arith.constant dense<0.000000e+00> : vector<2x8xf32>
    %362 = vector.multi_reduction <add>, %361, %cst_110 [1] : vector<2x8x8xf32> to vector<2x8xf32>
    %363 = vector.shape_cast %362 : vector<2x8xf32> to vector<2x1x8xf32>
    %cst_111 = arith.constant 0.000000e+00 : f32
    %364 = vector.broadcast %cst_111 : f32 to vector<2x1x8xf32>
    %365 = arith.maximumf %363, %364 : vector<2x1x8xf32>
    %366 = math.sqrt %365 : vector<2x1x8xf32>
    %367 = vector.broadcast %366 : vector<2x1x8xf32> to vector<2x8x8xf32>
    %368 = vector.broadcast %6 : vector<2x8x1xf32> to vector<2x8x8xf32>
    %369 = arith.mulf %367, %368 : vector<2x8x8xf32>
    %cst_112 = arith.constant 8.000000e-05 : f32
    %370 = vector.broadcast %cst_112 : f32 to vector<2x8x8xf32>
    %371 = arith.maximumf %369, %370 : vector<2x8x8xf32>
    %372 = tpu.reciprocal %371 {approx = true} : vector<2x8x8xf32> -> vector<2x8x8xf32>
    %373 = arith.mulf %348, %372 : vector<2x8x8xf32>
    %cst_113 = arith.constant 3.000000e+00 : f32
    %374 = vector.shape_cast %357 : vector<1x8x8xi1> to vector<1x8x8xi1>
    %375 = vector.broadcast %374 : vector<1x8x8xi1> to vector<2x8x8xi1>
    %376 = vector.broadcast %cst_113 : f32 to vector<2x8x8xf32>
    %377 = arith.select %375, %373, %376 : vector<2x8x8xi1>, vector<2x8x8xf32>
    %cst_114 = arith.constant dense<0x7F800000> : vector<2x8xf32>
    %378 = vector.multi_reduction <minimumf>, %377, %cst_114 [1] : vector<2x8x8xf32> to vector<2x8xf32>
    %379 = vector.shape_cast %378 : vector<2x8xf32> to vector<2x1x8xf32>
    %cst_115 = arith.constant 0.899999976 : f32
    %380 = vector.broadcast %cst_115 : f32 to vector<2x1x8xf32>
    %381 = arith.cmpf oge, %379, %380 : vector<2x1x8xf32>
    %cst_116 = arith.constant 8.000000e+00 : f32
    %cst_117 = arith.constant 5.000000e-01 : f32
    %382 = arith.subf %cst_116, %cst_117 : f32
    %383 = vector.broadcast %382 : f32 to vector<2x1x8xf32>
    %384 = arith.cmpf oge, %352, %383 : vector<2x1x8xf32>
    %385 = arith.andi %381, %384 : vector<2x1x8xi1>
    %c8_i32_118 = arith.constant 8 : i32
    %386 = vector.broadcast %c8_i32_118 : i32 to vector<1x1x8xi32>
    %387 = arith.addi %9, %386 : vector<1x1x8xi32>
    %c8_i32_119 = arith.constant 8 : i32
    %388 = vector.broadcast %c8_i32_119 : i32 to vector<1x1x8xi32>
    %389 = arith.cmpi sle, %387, %388 : vector<1x1x8xi32>
    %390 = vector.broadcast %389 : vector<1x1x8xi1> to vector<2x1x8xi1>
    %391 = arith.andi %385, %390 : vector<2x1x8xi1>
    %392 = arith.extui %391 : vector<2x1x8xi1> to vector<2x1x8xi32>
    %393 = arith.sitofp %392 : vector<2x1x8xi32> to vector<2x1x8xf32>
    %c0_120 = arith.constant 0 : index
    %c7 = arith.constant 7 : index
    %c0_121 = arith.constant 0 : index
    %394 = vector.load %arg3[%c0_120, %c7, %c0_121] : memref<2x8x8xf32, #tpu.memory_space<vmem>>, vector<2x1x8xf32>
    tpu.vector_store %arg3[%c0_120, %c7, %c0_121], %393 {strides = array<i32>} : memref<2x8x8xf32, #tpu.memory_space<vmem>>, vector<2x1x8xf32>,
    return
  }
  func.func @transform_0(%arg0: i32) -> (i32, i32, i32) {
    %c0_i32 = arith.constant 0 : i32
    %c0_i32_0 = arith.constant 0 : i32
    %c0_i32_1 = arith.constant 0 : i32
    return %arg0, %c0_i32, %c0_i32_0 : i32, i32, i32
  }
  func.func @transform_1(%arg0: i32) -> (i32, i32, i32) {
    %c0_i32 = arith.constant 0 : i32
    %c0_i32_0 = arith.constant 0 : i32
    %c0_i32_1 = arith.constant 0 : i32
    return %arg0, %c0_i32, %c0_i32_0 : i32, i32, i32
  }
  func.func @transform_2(%arg0: i32) -> (i32, i32, i32) {
    %c0_i32 = arith.constant 0 : i32
    %c0_i32_0 = arith.constant 0 : i32
    %c0_i32_1 = arith.constant 0 : i32
    return %arg0, %c0_i32, %c0_i32_0 : i32, i32, i32
  }
}

</mosaic_0001>

<bundles_post_ra>
// kernel: tpu_custom_call.1
= control target key start
LH: loop header
LB: loop body
LE: loop exit
PB: predicated region body
PF: predicated region fallthrough
CT: control target
= control target key end

     0   :  { %7 = vsyncpa [#allocation3], 0  ;;  %s1972_s0 = inlined_call_operand.hbm [shape: f32[2,8,32], index: 0, kind: input, shape index: {}]   ;;  %s1973_s1 = inlined_call_operand.vmem [shape: f32[2,1,8], index: 1, kind: input, shape index: {}]   ;;  %s1974_s2 = inlined_call_operand.hbm [shape: f32[2,8,8], index: 2, kind: output, shape index: {}]  }
   0x1   :  { %8 = vsyncpa [#allocation4], 0  ;;  %s1164_s9 = smov [#allocation2]   ;;  %s1116_s13 = scalar_lea.hbm %s1972_s0, 256 }
   0x2   :  { %s14_s10 = sshll.u32 %s1164_s9, 4  ;;  %p1117_p0 = scmp.ne.s32.totalorder %s1972_s0, %s1116_s13  ;;  %s15_s10 = int_to_ptr.vmem [resolvable:$true] %s14_s10 }
   0x3   :  { %p1120_p1 = scmp.lt.u32.totalorder %s1116_s13, %s1972_s0 }
   0x5   :  { %p1122_p2 = pnand %p1120_p1, %p1117_p0 }
   0x7   :  { %1125 = shalt.err (!%p1122_p2)
}
   0x8   :  { %s1126_s18 = scalar_lea.vmem %s15_s10, 256  ;;  %p1131_p4 = scmp.lt.s32.totalorder %s15_s10, %s15_s10 }
   0x9   :  { %p1127_p3 = scmp.ne.s32.totalorder %s15_s10, %s1126_s18  ;;  %p1132_p5 = scmp.lt.s32.totalorder %s1126_s18, %s1126_s18 }
   0xb   :  { %p1133_p6 = por %p1132_p5, %p1131_p4 }
   0xd   :  { %p1134_p7 = pnand %p1133_p6, %p1127_p3 }
   0xf   :  { %1137 = shalt.err (!%p1134_p7)
}
  0x10   :  { %s1165_s19 = smov 128   ;;  %s1166_s20 = smov 8  }
  0x11   :  { %20 = dma.hbm_to_vmem [thread:$0]  %s1972_s0, 256, %s15_s10, [#allocation3], %s1165_s19, %s1165_s19, %s1166_s20  }
  0x12   :  { %1160 = dma.done.wait [#allocation3], 256  }
  0x13   :  { %1161 = vsyncadd [#allocation3], 4294967040  ;;  %v1975_v0 = vmov 0.0   ;;  %vm1168_vm0 = vmmov 0   ;;  %vm30_vm1 = vcmask 261120   ;;  %v26_v1 = vld [vmem:[#allocation2] sm:$0xff]  ;;  %v199_v11 = vlaneseq }
  0x14   :  { %1024 = vmatprep.subr.mxu0 %v1975_v0  ;;  %1029 = vmatprep.subr.mxu1 %v1975_v0  ;;  %v27_v2 = vld [vmem:[#allocation2 + $0x8] sm:$0xff]  ;;  %s1169_s0 = smov 126   ;;  %s1170_s23 = smov 127   ;;  %v177_v7 = vmul.f32 %v26_v1, %v26_v1  ;;  %v1252_v14 = vld [vmem:[%s1973_s1 + $0x1] sm:$0x1]  ;;  %vm1998_vm3 = vcmask 64512  }
  0x15   :  { %1026 = vmatprep.mubr.msk.f32.mxu0 %vm1168_vm0, %v1975_v0  ;;  %1031 = vmatprep.mubr.msk.f32.mxu1 %vm1168_vm0, %v1975_v0  ;;  %s1171_s24 = smov 125   ;;  %s1172_s25 = smov 124   ;;  %v178_v9 = vmul.f32 %v27_v2, %v27_v2  ;;  %v1246_v12 = vshrl.u32 %v199_v11, 7  ;;  %v1257_v15 = vld [vmem:[%s1973_s1] sm:$0x1]  ;;  %v1271_v18 = vand.u32 127, %v199_v11 }
  0x16   :  { %1025 = vmatpush3.xpose.msk.msra.mxu0 %vm30_vm1, %v26_v1  ;;  %1030 = vmatpush3.xpose.msk.msra.mxu1 %vm30_vm1, %v27_v2  ;;  %s1173_s26 = smov 123   ;;  %s1174_s27 = smov 122   ;;  %v179_v8 = vsel %vm30_vm1, %v177_v7, 0.0  ;;  %vm286_vm5 = vcmask 56320   ;;  %vm2003_vm10 = vcmask 48128   ;;  %vm2002_vm13 = vcmask 39936  }
  0x17   :  { %s1175_s28 = smov 121   ;;  %v182_v10 = vsel %vm30_vm1, %v178_v9, 0.0  ;;  %v295_v13 = vsub.s32 0, %v1246_v12  ;;  %2004 = vst [vmem:[#allocation8_spill] sm:$0xff] %v1271_v18  ;;  %vm1275_vm2 = vcmp.eq.s32.totalorder %v1246_v12, %v1271_v18  ;;  %v1286_v25 = vadd.s32 1, %v1271_v18  ;;  %s1177_s1 = smov [#allocation5]  }
  0x18   :  { %v1291_v29 = vadd.s32 2, %v1271_v18  ;;  %v1296_v30 = vadd.s32 3, %v1271_v18  ;;  %v1307_v36 = vadd.s32 4, %v1271_v18  ;;  %v1320_v42 = vadd.s32 5, %v1271_v18  ;;  %s988_s5 = sshll.u32 %s1177_s1, 4  ;;  %s989_s5 = int_to_ptr.vmem [resolvable:$true] %s988_s5 }
  0x19   :  { %1027 = vmatmul.mubr.msk.f32.vlgmr.msra.gmra.mrb[0].mxu0 %vm30_vm1, %v26_v1  ;;  %1032 = vmatmul.mubr.msk.f32.vlgmr.msra.gmra.mrb[0].mxu1 %vm30_vm1, %v27_v2  ;;  %v300_v16 = vrot.slane %v1252_v14, %v295_v13  ;;  %v296_v17 = vrot.slane %v1257_v15, %v295_v13  ;;  %vm311_vm4 = vcmp.eq.s32.totalorder %v1246_v12, %v1286_v25  ;;  %v1343_v52 = vadd.s32 6, %v1271_v18  ;;  %s1138_s6 = scalar_lea.vmem %s989_s5, 256  ;;  %p1143_p9 = scmp.lt.s32.totalorder %s989_s5, %s989_s5 }
  0x1a   :  { %vm1300_vm6 = vmor %vm1275_vm2, %vm311_vm4  ;;  %vm410_vm7 = vcmp.eq.s32.totalorder %v1246_v12, %v1291_v29  ;;  %vm509_vm8 = vcmp.eq.s32.totalorder %v1246_v12, %v1296_v30  ;;  %2011 = vst [vmem:[#allocation9_spill] sm:$0xff] %v1320_v42  ;;  %vm608_vm12 = vcmp.eq.s32.totalorder %v1246_v12, %v1307_v36  ;;  %vm707_vm15 = vcmp.eq.s32.totalorder %v1246_v12, %v1320_v42  ;;  %p1139_p8 = scmp.ne.s32.totalorder %s989_s5, %s1138_s6  ;;  %p1144_p10 = scmp.lt.s32.totalorder %s1138_s6, %s1138_s6 }
  0x1b   :  { %vm1315_vm9 = vmor %vm1300_vm6, %vm410_vm7  ;;  %2014 = vst [vmem:[#allocation10_spill] sm:$0xff] %v1343_v52  ;;  %vm2001_vm0 = vcmask 31744   ;;  %v1176_v59 = vmov 0   ;;  %v1366_v63 = vadd.s32 7, %v1271_v18  ;;  %vm806_vm4 = vcmp.eq.s32.totalorder %v1246_v12, %v1343_v52 }
  0x1c   :  { %vm1330_vm11 = vmor %vm1315_vm9, %vm509_vm8  ;;  %vm2000_vm8 = vcmask 23552   ;;  %p1145_p11 = por %p1144_p10, %p1143_p9 }
  0x1d   :  { %vm609_vm14 = vmor %vm1330_vm11, %vm608_vm12  ;;  %2017 = vst [vmem:[#allocation11_spill] sm:$0xff] %v1366_v63 }
  0x1e   :  { %v1359_v60 = vsel %vm609_vm14, 1, %v1176_v59  ;;  %vm1361_vm1 = vmor %vm609_vm14, %vm707_vm15  ;;  %vm905_vm14 = vcmp.eq.s32.totalorder %v1246_v12, %v1366_v63  ;;  %p1146_p12 = pnand %p1145_p11, %p1139_p8 }
  0x1f   :  { %vm1997_vm7 = vcmp.eq.s32.totalorder %v1359_v60, 1  ;;  %vm1396_vm12 = vmor %vm1361_vm1, %vm806_vm4 }
  0x20   :  { %vm906_vm4 = vmor %vm1396_vm12, %vm905_vm14  ;;  %vm1993_vm14 = vcmask 7168  }
  0xec   :  { %v1216_v3 = vpop.f32.mrb[0].mxu0  ;;  %v1218_v4 = vpop.f32.mrb[0].mxu1 }
  0xed   :  { %389 = vrot.lane.b32.xlu1 %v1216_v3, %s1169_s0  ;;  %280 = vrot.lane.b32.xlu0 %v1216_v3, %s1170_s23  ;;  %v1028_v5 = vpop.f32.mrb[1].mxu0  ;;  %v1033_v6 = vpop.f32.mrb[1].mxu1  ;;  %v207_v22 = vsel %vm1275_vm2, %v1218_v4, 0.0  ;;  %v206_v23 = vsel %vm1275_vm2, %v1216_v3, 0.0 }
  0xee   :  { %v216_v27 = vsel %vm1998_vm3, %v207_v22, 0.0  ;;  %v209_v28 = vsel %vm1998_vm3, %v206_v23, 0.0 }
  0xef   :  { %v217_v31 = vrot.slane %v216_v27, 4  ;;  %v210_v32 = vrot.slane %v209_v28, 4 }
  0xf1   :  { %391 = vrot.lane.b32.xlu1 %v1218_v4, %s1169_s0  ;;  %282 = vrot.lane.b32.xlu0 %v1218_v4, %s1170_s23  ;;  %v218_v39 = vadd.f32 %v217_v31, %v216_v27  ;;  %v211_v40 = vadd.f32 %v210_v32, %v209_v28 }
  0xf3   :  { %v219_v48 = vrot.slane %v218_v39, 2  ;;  %v212_v49 = vrot.slane %v211_v40, 2 }
  0xf5   :  { %490 = vrot.lane.b32.xlu1 %v1218_v4, %s1171_s24  ;;  %488 = vrot.lane.b32.xlu0 %v1216_v3, %s1171_s24  ;;  %v1355_v57 = vadd.f32 %v219_v48, %v218_v39  ;;  %v1357_v58 = vadd.f32 %v212_v49, %v211_v40 }
  0xf9   :  { %589 = vrot.lane.b32.xlu1 %v1218_v4, %s1172_s25  ;;  %587 = vrot.lane.b32.xlu0 %v1216_v3, %s1172_s25 }
  0xfd   :  { %688 = vrot.lane.b32.xlu1 %v1218_v4, %s1173_s26  ;;  %686 = vrot.lane.b32.xlu0 %v1216_v3, %s1173_s26 }
 0x101   :  { %787 = vrot.lane.b32.xlu1 %v1218_v4, %s1174_s27  ;;  %785 = vrot.lane.b32.xlu0 %v1216_v3, %s1174_s27 }
 0x105   :  { %886 = vrot.lane.b32.xlu1 %v1218_v4, %s1175_s28  ;;  %884 = vrot.lane.b32.xlu0 %v1216_v3, %s1175_s28 }
 0x124   :  { %180 = vadd.xlane.f32.xlu0 %v179_v8 }
 0x129   :  { %183 = vadd.xlane.f32.xlu1 %v182_v10  ;;  %v1385_v10 = vsel %vm1361_vm1, 1, %v1176_v59  ;;  %vm1999_vm1 = vcmask 15360  }
 0x12a   :  { %2018 = vst [vmem:[#allocation12_spill] sm:$0xff] %v1385_v10  ;;  %vm1996_vm15 = vcmp.eq.s32.totalorder %v1385_v10, 1 }
 0x13a   :  { %303 = vrot.lane.b32.xlu1 %v300_v16, %s1170_s23  ;;  %301 = vrot.lane.b32.xlu0 %v296_v17, %s1170_s23 }
 0x13e   :  { %402 = vrot.lane.b32.xlu1 %v300_v16, %s1169_s0  ;;  %400 = vrot.lane.b32.xlu0 %v296_v17, %s1169_s0 }
 0x142   :  { %501 = vrot.lane.b32.xlu1 %v300_v16, %s1171_s24  ;;  %499 = vrot.lane.b32.xlu0 %v296_v17, %s1171_s24 }
 0x146   :  { %600 = vrot.lane.b32.xlu1 %v300_v16, %s1172_s25  ;;  %598 = vrot.lane.b32.xlu0 %v296_v17, %s1172_s25 }
 0x14a   :  { %699 = vrot.lane.b32.xlu1 %v300_v16, %s1173_s26  ;;  %697 = vrot.lane.b32.xlu0 %v296_v17, %s1173_s26 }
 0x14e   :  { %798 = vrot.lane.b32.xlu1 %v300_v16, %s1174_s27  ;;  %796 = vrot.lane.b32.xlu0 %v296_v17, %s1174_s27 }
 0x152   :  { %897 = vrot.lane.b32.xlu1 %v300_v16, %s1175_s28  ;;  %895 = vrot.lane.b32.xlu0 %v296_v17, %s1175_s28 }
 0x15f   :  { %v390_v19 = vpop.permute.xlu1 %389  ;;  %v281_v20 = vpop.permute.xlu0 %280 }
 0x160   :  { %v287_v37 = vsel %vm286_vm5, %v281_v20, 0.0  ;;  %v396_v50 = vsel %vm2003_vm10, %v390_v19, 0.0 }
 0x161   :  { %v1323_v43 = vadd.f32 %v287_v37, %v1216_v3 }
 0x163   :  { %v392_v24 = vpop.permute.xlu1 %391  ;;  %v283_v26 = vpop.permute.xlu0 %282  ;;  %v1349_v54 = vadd.f32 %v396_v50, %v1323_v43  ;;  %v315_v1 = vsel %vm1300_vm6, %v1323_v43, 0.0 }
 0x164   :  { %v288_v38 = vsel %vm286_vm5, %v283_v26, 0.0  ;;  %v397_v51 = vsel %vm2003_vm10, %v392_v24, 0.0  ;;  %v317_v11 = vsel %vm1998_vm3, %v315_v1, 0.0 }
 0x165   :  { %v1326_v44 = vadd.f32 %v288_v38, %v1218_v4  ;;  %v414_v9 = vsel %vm1315_vm9, %v1349_v54, 0.0  ;;  %v318_v28 = vrot.slane %v317_v11, 4 }
 0x166   :  { %v416_v23 = vsel %vm1998_vm3, %v414_v9, 0.0 }
 0x167   :  { %v491_v33 = vpop.permute.xlu1 %490  ;;  %v489_v34 = vpop.permute.xlu0 %488  ;;  %v1346_v53 = vadd.f32 %v397_v51, %v1326_v44  ;;  %v316_v55 = vsel %vm1300_vm6, %v1326_v44, 0.0  ;;  %v417_v37 = vrot.slane %v416_v23, 4  ;;  %v1440_v51 = vsel %vm906_vm4, 1, %v1176_v59 }
 0x168   :  { %v496_v56 = vsel %vm2002_vm13, %v491_v33, 0.0  ;;  %v495_v2 = vsel %vm2002_vm13, %v489_v34, 0.0  ;;  %v324_v7 = vsel %vm1998_vm3, %v316_v55, 0.0  ;;  %v1416_v33 = vsel %vm1396_vm12, 1, %v1176_v59  ;;  %2022 = vst [vmem:[#allocation14_spill] sm:$0xff] %v1440_v51 }
 0x169   :  { %v1377_v8 = vadd.f32 %v496_v56, %v1346_v53  ;;  %v1389_v13 = vadd.f32 %v495_v2, %v1349_v54  ;;  %v325_v22 = vrot.slane %v324_v7, 4  ;;  %v415_v24 = vsel %vm1315_vm9, %v1346_v53, 0.0  ;;  %2021 = vst [vmem:[#allocation13_spill] sm:$0xff] %v1416_v33 }
 0x16a   :  { %vm1995_vm12 = vcmp.eq.s32.totalorder %v1416_v33, 1  ;;  %v319_v55 = vadd.f32 %v318_v28, %v317_v11  ;;  %v418_v59 = vadd.f32 %v417_v37, %v416_v23  ;;  %vm1994_vm4 = vcmp.eq.s32.totalorder %v1440_v51, 1 }
 0x16b   :  { %v590_v46 = vpop.permute.xlu1 %589  ;;  %v588_v47 = vpop.permute.xlu0 %587  ;;  %v514_v31 = vsel %vm1330_vm11, %v1377_v8, 0.0  ;;  %v513_v38 = vsel %vm1330_vm11, %v1389_v13, 0.0 }
 0x16c   :  { %v595_v5 = vsel %vm2001_vm0, %v590_v46, 0.0  ;;  %v594_v26 = vsel %vm2001_vm0, %v588_v47, 0.0  ;;  %v326_v46 = vadd.f32 %v325_v22, %v324_v7  ;;  %v423_v47 = vsel %vm1998_vm3, %v415_v24, 0.0 }
 0x16d   :  { %v1392_v16 = vadd.f32 %v595_v5, %v1377_v8  ;;  %v1432_v48 = vadd.f32 %v594_v26, %v1389_v13  ;;  %v522_v49 = vsel %vm1998_vm3, %v514_v31, 0.0  ;;  %v515_v56 = vsel %vm1998_vm3, %v513_v38, 0.0 }
 0x16e   :  { %v424_v1 = vrot.slane %v423_v47, 4  ;;  %v327_v7 = vrot.slane %v326_v46, 2  ;;  %v523_v9 = vrot.slane %v522_v49, 4  ;;  %v516_v22 = vrot.slane %v515_v56, 4 }
 0x16f   :  { %v689_v62 = vpop.permute.xlu1 %688  ;;  %v687_v6 = vpop.permute.xlu0 %686  ;;  %v613_v39 = vsel %vm1997_vm7, %v1392_v16, 0.0  ;;  %v612_v11 = vsel %vm1997_vm7, %v1432_v48, 0.0 }
 0x170   :  { %v694_v32 = vsel %vm2000_vm8, %v689_v62, 0.0  ;;  %v693_v40 = vsel %vm2000_vm8, %v687_v6, 0.0  ;;  %v621_v61 = vsel %vm1998_vm3, %v613_v39, 0.0  ;;  %v328_v39 = vadd.f32 %v327_v7, %v326_v46 }
 0x171   :  { %v1437_v50 = vadd.f32 %v694_v32, %v1392_v16  ;;  %v1445_v62 = vadd.f32 %v693_v40, %v1432_v48  ;;  %v622_v24 = vrot.slane %v621_v61, 4  ;;  %v425_v32 = vadd.f32 %v424_v1, %v423_v47 }
 0x172   :  { %v524_v40 = vadd.f32 %v523_v9, %v522_v49  ;;  %v517_v20 = vadd.f32 %v516_v22, %v515_v56  ;;  %v2028_v49 = vrot.slane %v1355_v57, 1  ;;  %v329_v63 = vrot.slane %v328_v39, 1 }
 0x173   :  { %v788_v27 = vpop.permute.xlu1 %787  ;;  %v786_v34 = vpop.permute.xlu0 %785  ;;  %2023 = vst [vmem:[#allocation15_spill] sm:$0xff] %v1445_v62  ;;  %v712_v26 = vsel %vm1996_vm15, %v1437_v50, 0.0  ;;  %v711_v28 = vsel %vm1996_vm15, %v1445_v62, 0.0  ;;  %v623_v19 = vadd.f32 %v622_v24, %v621_v61  ;;  %v2029_v61 = vrot.slane %v1357_v58, 1 }
 0x174   :  { %v793_v12 = vsel %vm1999_vm1, %v788_v27, 0.0  ;;  %v792_v5 = vsel %vm1999_vm1, %v786_v34, 0.0  ;;  %v320_v27 = vrot.slane %v319_v55, 2  ;;  %v614_v34 = vsel %vm1998_vm3, %v612_v11, 0.0 }
 0x175   :  { %v1448_v2 = vadd.f32 %v793_v12, %v1437_v50  ;;  %v1462_v23 = vadd.f32 %v792_v5, %v1445_v62  ;;  %v419_v12 = vrot.slane %v418_v59, 2  ;;  %v720_v0 = vsel %vm1998_vm3, %v712_v26, 0.0 }
 0x176   :  { %v713_v5 = vsel %vm1998_vm3, %v711_v28, 0.0  ;;  %v615_v47 = vrot.slane %v614_v34, 4  ;;  %v222_v56 = vadd.f32 %v2028_v49, %v1355_v57  ;;  %v215_v7 = vadd.f32 %v2029_v61, %v1357_v58 }
 0x177   :  { %2024 = vst [vmem:[#allocation16_spill] sm:$0xff] %v1448_v2  ;;  %v887_v6 = vpop.permute.xlu1 %886  ;;  %v885_v17 = vpop.permute.xlu0 %884  ;;  %2025 = vst [vmem:[#allocation17_spill] sm:$0xff] %v1462_v23  ;;  %v811_v37 = vsel %vm1995_vm12, %v1448_v2, 0.0  ;;  %v810_v11 = vsel %vm1995_vm12, %v1462_v23, 0.0  ;;  %v426_v9 = vrot.slane %v425_v32, 2  ;;  %v321_v22 = vadd.f32 %v320_v27, %v319_v55 }
 0x178   :  { %v892_v31 = vsel %vm1993_vm14, %v887_v6, 0.0  ;;  %v891_v38 = vsel %vm1993_vm14, %v885_v17, 0.0  ;;  %v819_v1 = vsel %vm1998_vm3, %v811_v37, 0.0  ;;  %v721_v17 = vrot.slane %v720_v0, 4 }
 0x179   :  { %v1473_v6 = vadd.f32 %v892_v31, %v1448_v2  ;;  %v1480_v46 = vadd.f32 %v891_v38, %v1462_v23  ;;  %v525_v24 = vrot.slane %v524_v40, 2  ;;  %v420_v26 = vadd.f32 %v419_v12, %v418_v59 }
 0x17a   :  { %v714_v28 = vrot.slane %v713_v5, 4  ;;  %v518_v31 = vrot.slane %v517_v20, 2  ;;  %v820_v37 = vrot.slane %v819_v1, 4  ;;  %v812_v18 = vsel %vm1998_vm3, %v810_v11, 0.0 }
 0x17b   :  { %2026 = vst [vmem:[#allocation18_spill] sm:$0xff] %v1473_v6  ;;  %2027 = vst [vmem:[#allocation19_spill] sm:$0xff] %v1480_v46  ;;  %v910_v38 = vsel %vm1994_vm4, %v1473_v6, 0.0  ;;  %v624_v57 = vrot.slane %v623_v19, 2  ;;  %v616_v49 = vadd.f32 %v615_v47, %v614_v34  ;;  %v909_v58 = vsel %vm1994_vm4, %v1480_v46, 0.0 }
 0x17c   :  { %v1495_v61 = vmax.f32 %v222_v56, 0.0  ;;  %v1497_v55 = vmax.f32 %v215_v7, 0.0  ;;  %v427_v59 = vadd.f32 %v426_v9, %v425_v32  ;;  %v722_v27 = vadd.f32 %v721_v17, %v720_v0 }
 0x17d   :  { %v526_v12 = vadd.f32 %v525_v24, %v524_v40  ;;  %v715_v52 = vadd.f32 %v714_v28, %v713_v5  ;;  %v813_v11 = vrot.slane %v812_v18, 4  ;;  %v918_v33 = vsel %vm1998_vm3, %v910_v38, 0.0 }
 0x17e   :  { %v322_v42 = vrot.slane %v321_v22, 1  ;;  %v519_v6 = vadd.f32 %v518_v31, %v517_v20  ;;  %v821_v23 = vadd.f32 %v820_v37, %v819_v1  ;;  %v911_v34 = vsel %vm1998_vm3, %v909_v58, 0.0 }
 0x17f   :  { %v330_v47 = vadd.f32 %v329_v63, %v328_v39  ;;  %v421_v2 = vrot.slane %v420_v26, 1  ;;  %v625_v51 = vadd.f32 %v624_v57, %v623_v19  ;;  %v617_v46 = vrot.slane %v616_v49, 2 }
 0x180   :  { %v428_v56 = vrot.slane %v427_v59, 1  ;;  %v723_v10 = vrot.slane %v722_v27, 2  ;;  %v919_v7 = vrot.slane %v918_v33, 4  ;;  %1048 = vrsqrt.f32 %v1497_v55 }
 0x181   :  { %v527_v0 = vrot.slane %v526_v12, 1  ;;  %v716_v32 = vrot.slane %v715_v52, 2  ;;  %v814_v40 = vadd.f32 %v813_v11, %v812_v18  ;;  %v912_v5 = vrot.slane %v911_v34, 4 }
 0x182   :  { %v323_v9 = vadd.f32 %v322_v42, %v321_v22  ;;  %v520_v17 = vrot.slane %v519_v6, 1  ;;  %v822_v24 = vrot.slane %v821_v23, 2  ;;  %1050 = vrsqrt.f32 %v1495_v61 }
 0x183   :  { %v1503_v20 = vmax.f32 %v330_v47, 0.0  ;;  %v422_v63 = vadd.f32 %v421_v2, %v420_v26  ;;  %v626_v39 = vrot.slane %v625_v51, 1  ;;  %v618_v19 = vadd.f32 %v617_v46, %v616_v49 }
 0x184   :  { %v429_v1 = vadd.f32 %v428_v56, %v427_v59  ;;  %v724_v28 = vadd.f32 %v723_v10, %v722_v27  ;;  %v920_v31 = vadd.f32 %v919_v7, %v918_v33  ;;  %v528_v37 = vadd.f32 %v527_v0, %v526_v12 }
 0x185   :  { %v717_v38 = vadd.f32 %v716_v32, %v715_v52  ;;  %v815_v57 = vrot.slane %v814_v40, 2  ;;  %v913_v58 = vadd.f32 %v912_v5, %v911_v34  ;;  %v1505_v62 = vmax.f32 %v323_v9, 0.0 }
 0x186   :  { %v521_v18 = vadd.f32 %v520_v17, %v519_v6  ;;  %v823_v42 = vadd.f32 %v822_v24, %v821_v23  ;;  %1052 = vrsqrt.f32 %v1503_v20  ;;  %v1508_v22 = vmax.f32 %v422_v63, 0.0 }
 0x187   :  { %v627_v11 = vadd.f32 %v626_v39, %v625_v51  ;;  %v619_v47 = vrot.slane %v618_v19, 1  ;;  %v1510_v2 = vmax.f32 %v429_v1, 0.0  ;;  %v725_v46 = vrot.slane %v724_v28, 1 }
 0x188   :  { %v921_v26 = vrot.slane %v920_v31, 2  ;;  %v1512_v10 = vmax.f32 %v528_v37, 0.0  ;;  %v718_v33 = vrot.slane %v717_v38, 1  ;;  %v816_v52 = vadd.f32 %v815_v57, %v814_v40 }
 0x189   :  { %v914_v49 = vrot.slane %v913_v58, 2  ;;  %1054 = vrsqrt.f32 %v1505_v62  ;;  %v1515_v6 = vmax.f32 %v521_v18, 0.0  ;;  %v824_v23 = vrot.slane %v823_v42, 1 }
 0x18a   :  { %v1049_v59 = vpop.eup %1048  ;;  %1056 = vrsqrt.f32 %v1508_v22  ;;  %v1518_v27 = vmax.f32 %v627_v11, 0.0  ;;  %v620_v51 = vadd.f32 %v619_v47, %v618_v19  ;;  %v726_v34 = vadd.f32 %v725_v46, %v724_v28 }
 0x18b   :  { %1058 = vrsqrt.f32 %v1510_v2  ;;  %v922_v56 = vadd.f32 %v921_v26, %v920_v31  ;;  %v719_v7 = vadd.f32 %v718_v33, %v717_v38  ;;  %v817_v0 = vrot.slane %v816_v52, 1 }
 0x18c   :  { %v1051_v12 = vpop.eup %1050  ;;  %1060 = vrsqrt.f32 %v1512_v10  ;;  %v915_v32 = vadd.f32 %v914_v49, %v913_v58  ;;  %v825_v40 = vadd.f32 %v824_v23, %v823_v42  ;;  %v1524_v5 = vmax.f32 %v620_v51, 0.0 }
 0x18d   :  { %1062 = vrsqrt.f32 %v1515_v6  ;;  %v226_v9 = vmul.f32 %v1049_v59, %v1497_v55  ;;  %v233_v17 = vmul.f32 %v1051_v12, %v1495_v61  ;;  %v1528_v24 = vmax.f32 %v726_v34, 0.0 }
 0x18e   :  { %1064 = vrsqrt.f32 %v1518_v27  ;;  %v923_v63 = vrot.slane %v922_v56, 1  ;;  %v1530_v19 = vmax.f32 %v719_v7, 0.0  ;;  %v818_v1 = vadd.f32 %v817_v0, %v816_v52 }
 0x18f   :  { %v916_v28 = vrot.slane %v915_v32, 1  ;;  %v1532_v31 = vmax.f32 %v825_v40, 0.0  ;;  %vm227_vm14 = vcmp.eq.f32.partialorder %v1497_v55, inf  ;;  %vm229_vm4 = vcmp.eq.f32.partialorder %v1497_v55, 0.0 }
 0x190   :  { %v1053_v39 = vpop.eup %1052  ;;  %vm234_vm12 = vcmp.eq.f32.partialorder %v1495_v61, inf  ;;  %1066 = vrsqrt.f32 %v1524_v5  ;;  %v228_v37 = vsel %vm227_vm14, %v1497_v55, %v226_v9  ;;  %v230_v38 = vand.u32 2147483648, %v1497_v55 }
 0x191   :  { %v235_v57 = vsel %vm234_vm12, %v1495_v61, %v233_v17  ;;  %v341_v18 = vmul.f32 %v1053_v39, %v1503_v20  ;;  %1068 = vrsqrt.f32 %v1528_v24  ;;  %v924_v42 = vadd.f32 %v923_v63, %v922_v56 }
 0x192   :  { %v237_v11 = vand.u32 2147483648, %v1495_v61  ;;  %1070 = vrsqrt.f32 %v1530_v19  ;;  %v1545_v46 = vmax.f32 %v818_v1, 0.0  ;;  %v917_v26 = vadd.f32 %v916_v28, %v915_v32 }
 0x193   :  { %v1055_v58 = vpop.eup %1054  ;;  %vm236_vm14 = vcmp.eq.f32.partialorder %v1495_v61, 0.0  ;;  %vm335_vm15 = vcmp.eq.f32.partialorder %v1505_v62, inf  ;;  %1072 = vrsqrt.f32 %v1532_v31  ;;  %v1552_v52 = vsel %vm229_vm4, %v230_v38, %v228_v37 }
 0x194   :  { %v1057_v47 = vpop.eup %1056  ;;  %v1554_v49 = vsel %vm236_vm14, %v237_v11, %v235_v57  ;;  %v334_v23 = vmul.f32 %v1055_v58, %v1505_v62  ;;  %v338_v51 = vand.u32 2147483648, %v1505_v62  ;;  %vm342_vm12 = vcmp.eq.f32.partialorder %v1503_v20, inf }
 0x195   :  { %v1059_v33 = vpop.eup %1058  ;;  %v345_v61 = vand.u32 2147483648, %v1503_v20  ;;  %vm540_vm7 = vcmp.eq.f32.partialorder %v1512_v10, inf  ;;  %v543_v34 = vand.u32 2147483648, %v1512_v10  ;;  %v1562_v56 = vmax.f32 %v924_v42, 0.0 }
 0x196   :  { %v1061_v59 = vpop.eup %1060  ;;  %v343_v55 = vsel %vm342_vm12, %v1503_v20, %v341_v18  ;;  %vm533_vm4 = vcmp.eq.f32.partialorder %v1515_v6, inf  ;;  %v536_v0 = vand.u32 2147483648, %v1515_v6  ;;  %1074 = vrsqrt.f32 %v1545_v46 }
 0x197   :  { %v1063_v12 = vpop.eup %1062  ;;  %v1568_v32 = vmax.f32 %v917_v26, 0.0  ;;  %v440_v40 = vmul.f32 %v1059_v33, %v1510_v2  ;;  %v539_v9 = vmul.f32 %v1061_v59, %v1512_v10  ;;  %v642_v17 = vand.u32 2147483648, %v1518_v27 }
 0x198   :  { %v1065_v7 = vpop.eup %1064  ;;  %v635_v63 = vand.u32 2147483648, %v1524_v5  ;;  %vm344_vm14 = vcmp.eq.f32.partialorder %v1503_v20, 0.0  ;;  %v532_v39 = vmul.f32 %v1063_v12, %v1515_v6  ;;  %vm639_vm12 = vcmp.eq.f32.partialorder %v1518_v27, inf }
 0x199   :  { %vm632_vm3 = vcmp.eq.f32.partialorder %v1524_v5, inf  ;;  %v1578_v1 = vsel %vm344_vm14, %v345_v61, %v343_v55  ;;  %v336_v28 = vsel %vm335_vm15, %v1505_v62, %v334_v23  ;;  %vm337_vm1 = vcmp.eq.f32.partialorder %v1505_v62, 0.0 }
 0x19a   :  { %v638_v37 = vmul.f32 %v1065_v7, %v1518_v27  ;;  %1076 = vrsqrt.f32 %v1562_v56  ;;  %vm441_vm8 = vcmp.eq.f32.partialorder %v1510_v2, inf  ;;  %v433_v20 = vmul.f32 %v1057_v47, %v1508_v22  ;;  %v1067_v38 = vpop.eup %1066 }
 0x19b   :  { %vm738_vm0 = vcmp.eq.f32.partialorder %v1528_v24, inf  ;;  %v741_v57 = vand.u32 2147483648, %v1528_v24  ;;  %1078 = vrsqrt.f32 %v1568_v32  ;;  %v442_v18 = vsel %vm441_vm8, %v1510_v2, %v440_v40  ;;  %v1069_v42 = vpop.eup %1068 }
 0x19c   :  { %vm731_vm15 = vcmp.eq.f32.partialorder %v1530_v19, inf  ;;  %v734_v11 = vand.u32 2147483648, %v1530_v19  ;;  %v444_v47 = vand.u32 2147483648, %v1510_v2  ;;  %v1071_v26 = vpop.eup %1070  ;;  %vm837_vm14 = vcmp.eq.f32.partialorder %v1532_v31, inf }
 0x19d   :  { %v1601_v33 = vsel %vm337_vm1, %v338_v51, %v336_v28  ;;  %vm443_vm13 = vcmp.eq.f32.partialorder %v1510_v2, 0.0  ;;  %vm434_vm8 = vcmp.eq.f32.partialorder %v1508_v22, inf  ;;  %v1073_v59 = vpop.eup %1072  ;;  %v631_v23 = vmul.f32 %v1067_v38, %v1524_v5 }
 0x19e   :  { %v840_v61 = vand.u32 2147483648, %v1532_v31  ;;  %v1607_v12 = vsel %vm443_vm13, %v444_v47, %v442_v18  ;;  %v435_v55 = vsel %vm434_vm8, %v1508_v22, %v433_v20  ;;  %v737_v7 = vmul.f32 %v1069_v42, %v1528_v24 }
 0x19f   :  { %vm436_vm10 = vcmp.eq.f32.partialorder %v1508_v22, 0.0  ;;  %v437_v62 = vand.u32 2147483648, %v1508_v22  ;;  %v541_v2 = vsel %vm540_vm7, %v1512_v10, %v539_v9  ;;  %v730_v51 = vmul.f32 %v1071_v26, %v1530_v19 }
 0x1a0   :  { %vm830_vm1 = vcmp.eq.f32.partialorder %v1545_v46, inf  ;;  %v534_v20 = vsel %vm533_vm4, %v1515_v6, %v532_v39  ;;  %v1075_v18 = vpop.eup %1074  ;;  %v836_v42 = vmul.f32 %v1073_v59, %v1532_v31  ;;  %vm542_vm13 = vcmp.eq.f32.partialorder %v1512_v10, 0.0 }
 0x1a1   :  { %v438_v22 = vsel %vm436_vm10, %v437_v62, %v435_v55  ;;  %v1627_v9 = vsel %vm542_vm13, %v543_v34, %v541_v2  ;;  %vm535_vm7 = vcmp.eq.f32.partialorder %v1515_v6, 0.0  ;;  %v640_v47 = vsel %vm639_vm12, %v1518_v27, %v638_v37 }
 0x1a2   :  { %v633_v39 = vsel %vm632_vm3, %v1524_v5, %v631_v23  ;;  %v537_v28 = vsel %vm535_vm7, %v536_v0, %v534_v20  ;;  %vm641_vm10 = vcmp.eq.f32.partialorder %v1518_v27, 0.0  ;;  %v739_v10 = vsel %vm738_vm0, %v1528_v24, %v737_v7 }
 0x1a3   :  { %v829_v6 = vmul.f32 %v1075_v18, %v1545_v46  ;;  %v939_v55 = vand.u32 2147483648, %v1562_v56  ;;  %vm634_vm4 = vcmp.eq.f32.partialorder %v1524_v5, 0.0  ;;  %v732_v37 = vsel %vm731_vm15, %v1530_v19, %v730_v51 }
 0x1a4   :  { %v1077_v34 = vpop.eup %1076  ;;  %v1649_v0 = vsel %vm641_vm10, %v642_v17, %v640_v47  ;;  %v636_v7 = vsel %vm634_vm4, %v635_v63, %v633_v39  ;;  %vm740_vm3 = vcmp.eq.f32.partialorder %v1528_v24, 0.0  ;;  %v838_v62 = vsel %vm837_vm14, %v1532_v31, %v836_v42 }
 0x1a5   :  { %v1079_v23 = vpop.eup %1078  ;;  %v932_v20 = vand.u32 2147483648, %v1568_v32  ;;  %v1661_v18 = vsel %vm740_vm3, %v741_v57, %v739_v10  ;;  %vm733_vm0 = vcmp.eq.f32.partialorder %v1530_v19, 0.0  ;;  %vm2030_vm12 = vcmask 48128  }
 0x1a6   :  { %v735_v24 = vsel %vm733_vm0, %v734_v11, %v732_v37  ;;  %vm839_vm15 = vcmp.eq.f32.partialorder %v1532_v31, 0.0  ;;  %v935_v19 = vmul.f32 %v1077_v34, %v1562_v56  ;;  %v1676_v57 = vmul.f32 %v1079_v23, %v1568_v32  ;;  %vm2032_vm3 = vmmov %vm2030_vm12 }
 0x1a7   :  { %v1669_v42 = vsel %vm839_vm15, %v840_v61, %v838_v62  ;;  %vm832_vm7 = vcmp.eq.f32.partialorder %v1545_v46, 0.0  ;;  %vm929_vm10 = vcmp.eq.f32.partialorder %v1568_v32, inf  ;;  %vm2033_vm0 = vcmask 31744  }
 0x1b1   :  { %v1591_v58 = vpop.xlane.xlu0 %180 }
 0x1b2   :  { %1080 = vrsqrt.f32 %v1591_v58  ;;  %vm187_vm14 = vcmp.eq.f32.partialorder %v1591_v58, inf  ;;  %v190_v63 = vand.u32 2147483648, %v1591_v58  ;;  %vm189_vm8 = vcmp.eq.f32.partialorder %v1591_v58, 0.0 }
 0x1b5   :  { %v302_v40 = vpop.permute.xlu0 %301 }
 0x1b6   :  { %v1619_v38 = vpop.xlane.xlu1 %183  ;;  %v307_v26 = vsel %vm286_vm5, %v302_v40, 0.0 }
 0x1b7   :  { %1082 = vrsqrt.f32 %v1619_v38  ;;  %v1659_v51 = vadd.f32 %v307_v26, %v1257_v15  ;;  %v831_v15 = vsel %vm830_vm1, %v1545_v46, %v829_v6  ;;  %vm194_vm13 = vcmp.eq.f32.partialorder %v1619_v38, inf }
 0x1b8   :  { %vm936_vm1 = vcmp.eq.f32.partialorder %v1562_v56, inf  ;;  %v197_v23 = vand.u32 2147483648, %v1619_v38  ;;  %vm196_vm4 = vcmp.eq.f32.partialorder %v1619_v38, 0.0 }
 0x1b9   :  { %v401_v59 = vpop.permute.xlu0 %400 }
 0x1ba   :  { %v304_v40 = vpop.permute.xlu1 %303  ;;  %v406_v5 = vsel %vm2030_vm12, %v401_v59, 0.0  ;;  %vm938_vm12 = vcmp.eq.f32.partialorder %v1562_v56, 0.0 }
 0x1bb   :  { %v308_v11 = vsel %vm286_vm5, %v304_v40, 0.0  ;;  %v1685_v61 = vadd.f32 %v406_v5, %v1659_v51  ;;  %vm2031_vm5 = vcmask 39936  }
 0x1bc   :  { %v1081_v2 = vpop.eup %1080  ;;  %vm2034_vm15 = vmmov %vm2031_vm5 }
 0x1bd   :  { %v186_v27 = vmul.f32 %v1081_v2, %v1591_v58  ;;  %v500_v17 = vpop.permute.xlu0 %499 }
 0x1be   :  { %v403_v10 = vpop.permute.xlu1 %402  ;;  %v505_v40 = vsel %vm2031_vm5, %v500_v17, 0.0  ;;  %vm2039_vm5 = vcmask 64512  }
 0x1bf   :  { %v188_v47 = vsel %vm187_vm14, %v1591_v58, %v186_v27  ;;  %v407_v27 = vsel %vm2032_vm3, %v403_v10, 0.0  ;;  %v1711_v17 = vadd.f32 %v505_v40, %v1685_v61  ;;  %vm2036_vm14 = vcmask 23552   ;;  %vm2042_vm3 = vmmov %vm2039_vm5 }
 0x1c0   :  { %v1680_v31 = vsel %vm189_vm8, %v190_v63, %v188_v47  ;;  %vm2037_vm8 = vmmov %vm2033_vm0 }
 0x1c1   :  { %v1083_v39 = vpop.eup %1082  ;;  %v239_v26 = vmul.f32 %v1552_v52, %v1680_v31  ;;  %v347_v59 = vmul.f32 %v1601_v33, %v1680_v31  ;;  %v446_v34 = vmul.f32 %v438_v22, %v1680_v31  ;;  %v545_v58 = vmul.f32 %v537_v28, %v1680_v31  ;;  %v599_v6 = vpop.permute.xlu0 %598 }
 0x1c2   :  { %v193_v37 = vmul.f32 %v1083_v39, %v1619_v38  ;;  %v644_v62 = vmul.f32 %v636_v7, %v1680_v31  ;;  %v1701_v33 = vadd.f32 %v308_v11, %v1252_v14  ;;  %v502_v39 = vpop.permute.xlu1 %501 }
 0x1c3   :  { %v241_v52 = vmax.f32 %v239_v26, 1e-05  ;;  %v349_v28 = vmax.f32 %v347_v59, 2e-05  ;;  %v448_v22 = vmax.f32 %v446_v34, 3e-05 }
 0x1c4   :  { %v195_v2 = vsel %vm194_vm13, %v1619_v38, %v193_v37  ;;  %v547_v5 = vmax.f32 %v545_v58, 4e-05  ;;  %v646_v63 = vmax.f32 %v644_v62, 5e-05  ;;  %v1720_v11 = vadd.f32 %v407_v27, %v1701_v33 }
 0x1c5   :  { %1084 = vrcp.f32 %v241_v52  ;;  %v1708_v7 = vsel %vm196_vm4, %v197_v23, %v195_v2  ;;  %v604_v59 = vsel %vm2033_vm0, %v599_v6, 0.0  ;;  %v698_v10 = vpop.permute.xlu0 %697  ;;  %v506_v58 = vsel %vm2034_vm15, %v502_v39, 0.0 }
 0x1c6   :  { %v240_v14 = vmul.f32 %v1554_v49, %v1708_v7  ;;  %v348_v47 = vmul.f32 %v1578_v1, %v1708_v7  ;;  %1086 = vrcp.f32 %v349_v28  ;;  %v447_v38 = vmul.f32 %v1607_v12, %v1708_v7 }
 0x1c7   :  { %1088 = vrcp.f32 %v448_v22  ;;  %v546_v26 = vmul.f32 %v1627_v9, %v1708_v7  ;;  %v645_v12 = vmul.f32 %v1649_v0, %v1708_v7  ;;  %v743_v37 = vmul.f32 %v735_v24, %v1680_v31  ;;  %v601_v22 = vpop.permute.xlu1 %600 }
 0x1c8   :  { %v242_v49 = vmax.f32 %v240_v14, 1e-05  ;;  %v350_v34 = vmax.f32 %v348_v47, 2e-05  ;;  %v449_v1 = vmax.f32 %v447_v38, 3e-05  ;;  %1090 = vrcp.f32 %v547_v5 }
 0x1c9   :  { %1092 = vrcp.f32 %v646_v63  ;;  %v548_v23 = vmax.f32 %v546_v26, 4e-05  ;;  %v1731_v9 = vadd.f32 %v604_v59, %v1711_v17  ;;  %v744_v6 = vmul.f32 %v1661_v18, %v1708_v7 }
 0x1ca   :  { %1094 = vrcp.f32 %v242_v49  ;;  %v647_v40 = vmax.f32 %v645_v12, 5e-05  ;;  %v2035_v62 = vand.u32 2147483648, %v1545_v46  ;;  %v937_v0 = vsel %vm936_vm1, %v1562_v56, %v935_v19  ;;  %v797_v19 = vpop.permute.xlu0 %796 }
 0x1cb   :  { %1096 = vrcp.f32 %v350_v34  ;;  %v1743_v24 = vadd.f32 %v506_v58, %v1720_v11  ;;  %v746_v28 = vmax.f32 %v744_v6, 6e-05  ;;  %v930_v18 = vsel %vm929_vm10, %v1568_v32, %v1676_v57  ;;  %vm2041_vm10 = vmmov %vm2039_vm5 }
 0x1cc   :  { %v834_v52 = vsel %vm832_vm7, %v2035_v62, %v831_v15  ;;  %1098 = vrcp.f32 %v449_v1  ;;  %v745_v2 = vmax.f32 %v743_v37, 6e-05  ;;  %v703_v27 = vsel %vm2036_vm14, %v698_v10, 0.0  ;;  %vm2040_vm7 = vmmov %vm2039_vm5 }
 0x1cd   :  { %v843_v46 = vmul.f32 %v1669_v42, %v1708_v7  ;;  %v842_v15 = vmul.f32 %v834_v52, %v1680_v31  ;;  %1100 = vrcp.f32 %v548_v23  ;;  %v605_v5 = vsel %vm2037_vm8, %v601_v22, 0.0  ;;  %vm2044_vm14 = vmmov %vm2042_vm3 }
 0x1ce   :  { %v1755_v63 = vadd.f32 %v703_v27, %v1731_v9  ;;  %vm2038_vm13 = vcmask 15360   ;;  %1102 = vrcp.f32 %v647_v40  ;;  %vm931_vm1 = vcmp.eq.f32.partialorder %v1568_v32, 0.0 }
 0x1cf   :  { %v802_v14 = vsel %vm2038_vm13, %v797_v19, 0.0  ;;  %v1085_v47 = vpop.eup %1084  ;;  %v845_v57 = vmax.f32 %v843_v46, 7e-05  ;;  %v844_v38 = vmax.f32 %v842_v15, 7e-05  ;;  %1104 = vrcp.f32 %v746_v28  ;;  %vm2045_vm13 = vmmov %vm2042_vm3 }
 0x1d0   :  { %v1087_v39 = vpop.eup %1086  ;;  %v245_v42 = vmul.f32 %v1085_v47, %v1216_v3  ;;  %v940_v26 = vsel %vm938_vm12, %v939_v55, %v937_v0  ;;  %v1766_v59 = vsel %vm931_vm1, %v932_v20, %v930_v18  ;;  %v1770_v34 = vadd.f32 %v605_v5, %v1743_v24  ;;  %vm2043_vm12 = vmmov %vm2042_vm3 }
 0x1d1   :  { %v1089_v10 = vpop.eup %1088  ;;  %v353_v49 = vmul.f32 %v1087_v39, %v1323_v43  ;;  %1106 = vrcp.f32 %v745_v2  ;;  %v1773_v1 = vadd.f32 %v802_v14, %v1755_v63  ;;  %v1779_v32 = vmul.f32 %v940_v26, %v1708_v7  ;;  %vm2046_vm1 = vmmov %vm2042_vm3 }
 0x1d2   :  { %v1091_v3 = vpop.eup %1090  ;;  %v247_v58 = vsel %vm1275_vm2, %v245_v42, 3.0  ;;  %v452_v56 = vmul.f32 %v1089_v10, %v1349_v54  ;;  %1108 = vrcp.f32 %v845_v57  ;;  %vm266_vm4 = vcmp.le.s32.totalorder %v1286_v25, 8 }
 0x1d3   :  { %v1093_v55 = vpop.eup %1092  ;;  %v249_v43 = vsel %vm2039_vm5, %v247_v58, inf  ;;  %v355_v20 = vsel %vm1300_vm6, %v353_v49, 3.0  ;;  %v551_v12 = vmul.f32 %v1091_v3, %v1389_v13  ;;  %1110 = vrcp.f32 %v844_v38 }
 0x1d4   :  { %v1095_v37 = vpop.eup %1094  ;;  %v250_v23 = vrot.slane %v249_v43, 4  ;;  %v357_v6 = vsel %vm2040_vm7, %v355_v20, inf  ;;  %v454_v54 = vsel %vm1315_vm9, %v452_v56, 3.0  ;;  %v1789_v40 = vmul.f32 %v1093_v55, %v1432_v48 }
 0x1d5   :  { %v1097_v7 = vpop.eup %1096  ;;  %v246_v62 = vmul.f32 %v1095_v37, %v1218_v4  ;;  %v358_v52 = vrot.slane %v357_v6, 4  ;;  %v456_v0 = vsel %vm2041_vm10, %v454_v54, inf  ;;  %v553_v13 = vsel %vm1330_vm11, %v551_v12, 3.0 }
 0x1d6   :  { %v1099_v28 = vpop.eup %1098  ;;  %v251_v18 = vmin.f32 %v249_v43, %v250_v23  ;;  %v354_v22 = vmul.f32 %v1097_v7, %v1326_v44  ;;  %v457_v2 = vrot.slane %v456_v0, 4  ;;  %v555_v27 = vsel %vm2042_vm3, %v553_v13, inf }
 0x1d7   :  { %v248_v48 = vsel %vm1275_vm2, %v246_v62, 3.0  ;;  %v359_v46 = vmin.f32 %v357_v6, %v358_v52  ;;  %v453_v4 = vmul.f32 %v1099_v28, %v1346_v53  ;;  %v556_v15 = vrot.slane %v555_v27, 4  ;;  %v1101_v19 = vpop.eup %1100 }
 0x1d8   :  { %vm275_vm0 = vcmask 57344   ;;  %v252_v5 = vrot.slane %v251_v18, 2  ;;  %v256_v14 = vsel %vm2043_vm12, %v248_v48, inf  ;;  %vm378_vm15 = vcmp.le.s32.totalorder %v1291_v29, 8  ;;  %v1103_v57 = vpop.eup %1102  ;;  %v2053_v29 = vld [vmem:[#allocation12_spill] sm:$0xff] }
 0x1d9   :  { %v356_v44 = vsel %vm1300_vm6, %v354_v22, 3.0  ;;  %v458_v47 = vmin.f32 %v456_v0, %v457_v2  ;;  %v257_v38 = vrot.slane %v256_v14, 4  ;;  %v360_v39 = vrot.slane %v359_v46, 2  ;;  %v1809_v42 = vpop.eup %1104 }
 0x1da   :  { %v364_v21 = vsel %vm2044_vm14, %v356_v44, inf  ;;  %vm373_vm2 = vcmp.ge.f32.partialorder %v1659_v51, 1.5  ;;  %v455_v53 = vsel %vm1315_vm9, %v453_v4, 3.0  ;;  %v253_v26 = vmin.f32 %v251_v18, %v252_v5 }
 0x1db   :  { %v365_v10 = vrot.slane %v364_v21, 4  ;;  %vm477_vm8 = vcmp.le.s32.totalorder %v1296_v30, 8  ;;  %v463_v35 = vsel %vm2045_vm13, %v455_v53, inf  ;;  %v459_v49 = vrot.slane %v458_v47, 2  ;;  %v1813_v3 = vpop.eup %1106 }
 0x1dc   :  { %v258_v58 = vmin.f32 %v256_v14, %v257_v38  ;;  %v361_v56 = vmin.f32 %v359_v46, %v360_v39  ;;  %v464_v55 = vrot.slane %v463_v35, 4  ;;  %vm472_vm6 = vcmp.ge.f32.partialorder %v1685_v61, 2.5  ;;  %v1817_v41 = vpop.eup %1108 }
 0x1dd   :  { %v552_v43 = vmul.f32 %v1101_v19, %v1377_v8  ;;  %v254_v20 = vrot.slane %v253_v26, 1  ;;  %v366_v12 = vmin.f32 %v364_v21, %v365_v10  ;;  %v460_v37 = vmin.f32 %v458_v47, %v459_v49  ;;  %v1819_v6 = vpop.eup %1110 }
 0x1de   :  { %v557_v23 = vmin.f32 %v555_v27, %v556_v15  ;;  %v259_v54 = vrot.slane %v258_v58, 2  ;;  %v362_v7 = vrot.slane %v361_v56, 1  ;;  %v465_v62 = vmin.f32 %v463_v35, %v464_v55 }
 0x1df   :  { %v554_v52 = vsel %vm1330_vm11, %v552_v43, 3.0  ;;  %v255_v0 = vmin.f32 %v253_v26, %v254_v20  ;;  %v367_v13 = vrot.slane %v366_v12, 2  ;;  %vm374_vm9 = vcmp.ge.f32.partialorder %v1701_v33, 1.5  ;;  %v2052_v20 = vld [vmem:[#allocation15_spill] sm:$0xff] }
 0x1e0   :  { %v461_v28 = vrot.slane %v460_v37, 1  ;;  %v562_v8 = vsel %vm2046_vm1, %v554_v52, inf  ;;  %v260_v18 = vmin.f32 %v258_v58, %v259_v54  ;;  %v363_v22 = vmin.f32 %v361_v56, %v362_v7 }
 0x1e1   :  { %v466_v2 = vrot.slane %v465_v62, 2  ;;  %v563_v48 = vrot.slane %v562_v8, 4  ;;  %vm263_vm5 = vcmp.ge.f32.partialorder %v255_v0, 0.9  ;;  %v368_v27 = vmin.f32 %v366_v12, %v367_v13 }
 0x1e2   :  { %vm473_vm7 = vcmp.ge.f32.partialorder %v1720_v11, 2.5  ;;  %v462_v46 = vmin.f32 %v460_v37, %v461_v28  ;;  %v558_v4 = vrot.slane %v557_v23, 2  ;;  %vm269_vm11 = vmand %vm263_vm5, %vm266_vm4  ;;  %v261_v45 = vrot.slane %v260_v18, 1 }
 0x1e3   :  { %vm371_vm10 = vcmp.ge.f32.partialorder %v363_v22, 0.9  ;;  %v467_v15 = vmin.f32 %v465_v62, %v466_v2  ;;  %v564_v19 = vmin.f32 %v562_v8, %v563_v48  ;;  %v2047_v5 = vmov 0.0   ;;  %v2057_v62 = vld [vmem:[#allocation17_spill] sm:$0xff] }
 0x1e4   :  { %v1004_v14 = vsel %vm269_vm11, 1.0, %v2047_v5  ;;  %v369_v44 = vrot.slane %v368_v27, 1  ;;  %vm375_vm3 = vmand %vm371_vm10, %vm373_vm2  ;;  %vm470_vm12 = vcmp.ge.f32.partialorder %v462_v46, 0.9  ;;  %v559_v47 = vmin.f32 %v557_v23, %v558_v4  ;;  %v2064_v8 = vld [vmem:[#allocation13_spill] sm:$0xff]  ;;  %v700_v46 = vpop.permute.xlu1 %699 }
 0x1e5   :  { %vm571_vm14 = vcmp.ge.f32.partialorder %v1711_v17, 3.5  ;;  %276 = vst.msk [vmem:[#allocation5] sm:$0x1] %vm275_vm0, %v1004_v14  ;;  %v262_v38 = vmin.f32 %v260_v18, %v261_v45  ;;  %vm381_vm13 = vmand %vm375_vm3, %vm378_vm15  ;;  %v468_v21 = vrot.slane %v467_v15, 1  ;;  %v565_v39 = vrot.slane %v564_v19, 2 }
 0x1e6   :  { %v651_v53 = vmul.f32 %v1103_v57, %v1392_v16  ;;  %v370_v51 = vmin.f32 %v368_v27, %v369_v44  ;;  %v1006_v26 = vsel %vm381_vm13, 1.0, %v2047_v5  ;;  %vm474_vm2 = vmand %vm470_vm12, %vm472_vm6  ;;  %v560_v10 = vrot.slane %v559_v47, 1 }
 0x1e7   :  { %vm2048_vm11 = vcmp.eq.s32.totalorder %v1359_v60, 1  ;;  %vm264_vm10 = vcmp.ge.f32.partialorder %v262_v38, 0.9  ;;  %387 = vst.msk [vmem:[#allocation5 + $0x1] sm:$0x1] %vm275_vm0, %v1006_v26  ;;  %v469_v49 = vmin.f32 %v467_v15, %v468_v21  ;;  %vm480_vm3 = vmand %vm474_vm2, %vm477_vm8  ;;  %v566_v58 = vmin.f32 %v564_v19, %v565_v39 }
 0x1e8   :  { %v652_v35 = vsel %vm2048_vm11, %v1789_v40, 3.0  ;;  %vm2049_vm1 = vmmov %vm2048_vm11  ;;  %vm372_vm6 = vcmp.ge.f32.partialorder %v370_v51, 0.9  ;;  %v1008_v61 = vsel %vm480_vm3, 1.0, %v2047_v5  ;;  %v561_v57 = vmin.f32 %v559_v47, %v560_v10 }
 0x1e9   :  { %v653_v16 = vsel %vm2049_vm1, %v651_v53, 3.0  ;;  %vm270_vm13 = vmand %vm264_vm10, %vm266_vm4  ;;  %vm2050_vm12 = vcmask 64512   ;;  %vm471_vm5 = vcmp.ge.f32.partialorder %v469_v49, 0.9  ;;  %486 = vst.msk [vmem:[#allocation5 + $0x2] sm:$0x1] %vm275_vm0, %v1008_v61  ;;  %v750_v43 = vmul.f32 %v1809_v42, %v1437_v50 }
 0x1ea   :  { %v661_v40 = vsel %vm2050_vm12, %v653_v16, inf  ;;  %v1005_v56 = vsel %vm270_vm13, 1.0, %v2047_v5  ;;  %vm376_vm11 = vmand %vm372_vm6, %vm374_vm9  ;;  %v567_v55 = vrot.slane %v566_v58, 1  ;;  %vm569_vm1 = vcmp.ge.f32.partialorder %v561_v57, 0.9  ;;  %v2056_v42 = vld [vmem:[#allocation16_spill] sm:$0xff]  ;;  %v799_v57 = vpop.permute.xlu1 %798 }
 0x1eb   :  { %v662_v60 = vrot.slane %v661_v40, 4  ;;  %277 = vst.msk [vmem:[#allocation5 + $0x8] sm:$0x1] %vm275_vm0, %v1005_v56  ;;  %vm382_vm4 = vmand %vm376_vm11, %vm378_vm15  ;;  %v749_v33 = vmul.f32 %v1813_v3, %v2052_v20  ;;  %vm2054_vm10 = vcmp.eq.s32.totalorder %v2053_v29, 1  ;;  %v849_v3 = vmul.f32 %v1817_v41, %v2056_v42  ;;  %v2061_v41 = vld [vmem:[#allocation9_spill] sm:$0xff]  ;;  %v2073_v29 = vld [vmem:[#allocation10_spill] sm:$0xff] }
 0x1ec   :  { %vm2051_vm2 = vmmov %vm2050_vm12  ;;  %v1007_v12 = vsel %vm382_vm4, 1.0, %v2047_v5  ;;  %v568_v37 = vmin.f32 %v566_v58, %v567_v55  ;;  %v752_v7 = vsel %vm2054_vm10, %v750_v43, 3.0  ;;  %v848_v11 = vmul.f32 %v1819_v6, %v2057_v62 }
 0x1ed   :  { %v654_v25 = vsel %vm2051_vm2, %v652_v35, inf  ;;  %vm475_vm9 = vmand %vm471_vm5, %vm473_vm7  ;;  %v663_v23 = vmin.f32 %v661_v40, %v662_v60  ;;  %388 = vst.msk [vmem:[#allocation5 + $0x9] sm:$0x1] %vm275_vm0, %v1007_v12  ;;  %vm675_vm6 = vcmp.le.s32.totalorder %v2061_v41, 8  ;;  %vm2065_vm4 = vcmp.eq.s32.totalorder %v2064_v8, 1 }
 0x1ee   :  { %v655_v54 = vrot.slane %v654_v25, 4  ;;  %vm481_vm15 = vmand %vm475_vm9, %vm477_vm8  ;;  %vm570_vm7 = vcmp.ge.f32.partialorder %v568_v37, 0.9  ;;  %vm2060_vm8 = vcmp.ge.f32.partialorder %v1743_v24, 3.5  ;;  %v851_v17 = vsel %vm2065_vm4, %v849_v3, 3.0 }
 0x1ef   :  { %vm2055_vm3 = vmmov %vm2054_vm10  ;;  %v1009_v52 = vsel %vm481_vm15, 1.0, %v2047_v5  ;;  %v664_v0 = vrot.slane %v663_v23, 2  ;;  %vm671_vm10 = vcmp.ge.f32.partialorder %v1770_v34, 4.5  ;;  %v944_v26 = vmax.f32 %v1779_v32, 8e-05 }
 0x1f0   :  { %v751_v50 = vsel %vm2055_vm3, %v749_v33, 3.0  ;;  %vm1883_vm5 = vmand %vm569_vm1, %vm571_vm14  ;;  %v656_v13 = vmin.f32 %v654_v25, %v655_v54  ;;  %487 = vst.msk [vmem:[#allocation5 + $0xa] sm:$0x1] %vm275_vm0, %v1009_v52  ;;  %vm2067_vm1 = vcmp.le.s32.totalorder %v1307_v36, 8  ;;  %v941_v55 = vmul.f32 %v1766_v59, %v1680_v31  ;;  %v2075_v52 = vld [vmem:[#allocation18_spill] sm:$0xff] }
 0x1f1   :  { %vm574_vm13 = vmand %vm570_vm7, %vm2060_vm8  ;;  %v665_v22 = vmin.f32 %v663_v23, %v664_v0  ;;  %vm2071_vm8 = vcmask 23552   ;;  %1112 = vrcp.f32 %v944_v26  ;;  %v2076_v0 = vld [vmem:[#allocation14_spill] sm:$0xff] }
 0x1f2   :  { %vm2062_vm12 = vmmov %vm2051_vm2  ;;  %v657_v2 = vrot.slane %v656_v13, 2  ;;  %v704_v36 = vsel %vm2071_vm8, %v700_v46, 0.0  ;;  %v943_v59 = vmax.f32 %v941_v55, 8e-05  ;;  %vm769_vm8 = vcmp.ge.f32.partialorder %v1755_v63, 5.5 }
 0x1f3   :  { %v760_v6 = vsel %vm2062_vm12, %v752_v7, inf  ;;  %vm2063_vm11 = vmmov %vm2051_vm2  ;;  %v666_v19 = vrot.slane %v665_v22, 1  ;;  %v706_v32 = vadd.f32 %v704_v36, %v1770_v34  ;;  %v2083_v36 = vld [vmem:[#allocation8_spill] sm:$0xff] }
 0x1f4   :  { %v753_v28 = vsel %vm2063_vm11, %v751_v50, inf  ;;  %vm2066_vm14 = vmmov %vm2065_vm4  ;;  %v761_v48 = vrot.slane %v760_v6, 4  ;;  %v658_v14 = vmin.f32 %v656_v13, %v657_v2  ;;  %1114 = vrcp.f32 %v943_v59 }
 0x1f5   :  { %v850_v18 = vsel %vm2066_vm14, %v848_v11, 3.0  ;;  %vm580_vm2 = vmand %vm574_vm13, %vm2067_vm1  ;;  %v754_v24 = vrot.slane %v753_v28, 4  ;;  %v667_v39 = vmin.f32 %v665_v22, %v666_v19  ;;  %vm2072_vm14 = vcmask 15360   ;;  %v2074_v11 = vld [vmem:[#allocation11_spill] sm:$0xff] }
 0x1f6   :  { %v1011_v27 = vsel %vm580_vm2, 1.0, %v2047_v5  ;;  %vm2068_vm9 = vmmov %vm2067_vm1  ;;  %v762_v44 = vmin.f32 %v760_v6, %v761_v48  ;;  %v659_v53 = vrot.slane %v658_v14, 1  ;;  %v803_v25 = vsel %vm2072_vm14, %v799_v57, 0.0  ;;  %v2079_v22 = vld [vmem:[#allocation19_spill] sm:$0xff] }
 0x1f7   :  { %vm579_vm15 = vmand %vm1883_vm5, %vm2068_vm9  ;;  %586 = vst.msk [vmem:[#allocation5 + $0xb] sm:$0x1] %vm275_vm0, %v1011_v27  ;;  %v755_v47 = vmin.f32 %v753_v28, %v754_v24  ;;  %vm670_vm5 = vcmp.ge.f32.partialorder %v1731_v9, 4.5  ;;  %vm669_vm13 = vcmp.ge.f32.partialorder %v667_v39, 0.9  ;;  %v805_v9 = vadd.f32 %v803_v25, %v706_v32 }
 0x1f8   :  { %vm2069_vm3 = vmmov %vm2063_vm11  ;;  %v1010_v15 = vsel %vm579_vm15, 1.0, %v2047_v5  ;;  %v763_v51 = vrot.slane %v762_v44, 2  ;;  %v660_v58 = vmin.f32 %v658_v14, %v659_v53  ;;  %vm770_vm15 = vcmp.ge.f32.partialorder %v706_v32, 5.5 }
 0x1f9   :  { %v859_v4 = vsel %vm2069_vm3, %v851_v17, inf  ;;  %vm2070_vm7 = vmmov %vm2069_vm3  ;;  %585 = vst.msk [vmem:[#allocation5 + $0x3] sm:$0x1] %vm275_vm0, %v1010_v15  ;;  %v756_v10 = vrot.slane %v755_v47, 2  ;;  %vm873_vm14 = vcmp.le.s32.totalorder %v2074_v11, 8  ;;  %v898_v17 = vpop.permute.xlu1 %897 }
 0x1fa   :  { %v852_v45 = vsel %vm2070_vm7, %v850_v18, inf  ;;  %v860_v38 = vrot.slane %v859_v4, 4  ;;  %v764_v16 = vmin.f32 %v762_v44, %v763_v51  ;;  %vm673_vm12 = vmand %vm669_vm13, %vm671_vm10  ;;  %vm668_vm4 = vcmp.ge.f32.partialorder %v660_v58, 0.9  ;;  %v896_v44 = vpop.permute.xlu0 %895 }
 0x1fb   :  { %v853_v21 = vrot.slane %v852_v45, 4  ;;  %v757_v61 = vmin.f32 %v755_v47, %v756_v10  ;;  %vm679_vm11 = vmand %vm673_vm12, %vm675_vm6  ;;  %vm774_vm10 = vcmp.le.s32.totalorder %v2073_v29, 8  ;;  %v1113_v3 = vpop.eup %1112  ;;  %v971_v47 = vadd.s32 8, %v2083_v36 }
 0x1fc   :  { %v861_v35 = vmin.f32 %v859_v4, %v860_v38  ;;  %v765_v60 = vrot.slane %v764_v16, 1  ;;  %v1013_v43 = vsel %vm679_vm11, 1.0, %v2047_v5  ;;  %vm672_vm1 = vmand %vm668_vm4, %vm670_vm5  ;;  %vm869_vm11 = vcmp.ge.f32.partialorder %v805_v9, 6.5 }
 0x1fd   :  { %v854_v49 = vmin.f32 %v852_v45, %v853_v21  ;;  %v758_v20 = vrot.slane %v757_v61, 1  ;;  %685 = vst.msk [vmem:[#allocation5 + $0xc] sm:$0x1] %vm275_vm0, %v1013_v43  ;;  %vm678_vm2 = vmand %vm672_vm1, %vm675_vm6  ;;  %v948_v30 = vmul.f32 %v1113_v3, %v2075_v52 }
 0x1fe   :  { %v862_v40 = vrot.slane %v861_v35, 2  ;;  %v766_v31 = vmin.f32 %v764_v16, %v765_v60  ;;  %v1012_v34 = vsel %vm678_vm2, 1.0, %v2047_v5  ;;  %v1115_v8 = vpop.eup %1114 }
 0x1ff   :  { %v855_v56 = vrot.slane %v854_v49, 2  ;;  %v759_v37 = vmin.f32 %v757_v61, %v758_v20  ;;  %684 = vst.msk [vmem:[#allocation5 + $0x4] sm:$0x1] %vm275_vm0, %v1012_v34  ;;  %v947_v2 = vmul.f32 %v1115_v8, %v2079_v22 }
 0x200   :  { %v863_v33 = vmin.f32 %v861_v35, %v862_v40  ;;  %vm768_vm9 = vcmp.ge.f32.partialorder %v766_v31, 0.9 }
 0x201   :  { %v856_v12 = vmin.f32 %v854_v49, %v855_v56  ;;  %vm772_vm3 = vmand %vm768_vm9, %vm770_vm15  ;;  %vm767_vm7 = vcmp.ge.f32.partialorder %v759_v37, 0.9  ;;  %vm868_vm9 = vcmp.ge.f32.partialorder %v1773_v1, 6.5 }
 0x202   :  { %v864_v23 = vrot.slane %v863_v33, 1  ;;  %vm778_vm6 = vmand %vm772_vm3, %vm774_vm10  ;;  %vm2077_vm3 = vcmp.eq.s32.totalorder %v2076_v0, 1 }
 0x203   :  { %v857_v54 = vrot.slane %v856_v12, 1  ;;  %v1015_v42 = vsel %vm778_vm6, 1.0, %v2047_v5  ;;  %vm771_vm5 = vmand %vm767_vm7, %vm769_vm8  ;;  %v950_v13 = vsel %vm2077_vm3, %v948_v30, 3.0  ;;  %vm2078_vm7 = vcmask 64512  }
 0x204   :  { %v865_v7 = vmin.f32 %v863_v33, %v864_v23  ;;  %784 = vst.msk [vmem:[#allocation5 + $0xd] sm:$0x1] %vm275_vm0, %v1015_v42  ;;  %vm777_vm12 = vmand %vm771_vm5, %vm774_vm10  ;;  %v958_v41 = vsel %vm2078_vm7, %v950_v13, inf  ;;  %vm2081_vm8 = vcmask 7168  }
 0x205   :  { %v858_v50 = vmin.f32 %v856_v12, %v857_v54  ;;  %v1014_v62 = vsel %vm777_vm12, 1.0, %v2047_v5  ;;  %v959_v28 = vrot.slane %v958_v41, 4  ;;  %vm2080_vm6 = vmmov %vm2077_vm3  ;;  %v902_v27 = vsel %vm2081_vm8, %v898_v17, 0.0 }
 0x206   :  { %vm867_vm13 = vcmp.ge.f32.partialorder %v865_v7, 0.9  ;;  %783 = vst.msk [vmem:[#allocation5 + $0x5] sm:$0x1] %vm275_vm0, %v1014_v62  ;;  %v949_v24 = vsel %vm2080_vm6, %v947_v2, 3.0  ;;  %vm2082_vm5 = vmmov %vm2078_vm7  ;;  %v904_v15 = vadd.f32 %v902_v27, %v805_v9 }
 0x207   :  { %vm866_vm4 = vcmp.ge.f32.partialorder %v858_v50, 0.9  ;;  %vm871_vm1 = vmand %vm867_vm13, %vm869_vm11  ;;  %v960_v18 = vmin.f32 %v958_v41, %v959_v28  ;;  %v951_v46 = vsel %vm2082_vm5, %v949_v24, inf }
 0x208   :  { %vm877_vm2 = vmand %vm871_vm1, %vm873_vm14  ;;  %v952_v45 = vrot.slane %v951_v46, 4  ;;  %vm968_vm11 = vcmp.ge.f32.partialorder %v904_v15, 7.5 }
 0x209   :  { %v1017_v63 = vsel %vm877_vm2, 1.0, %v2047_v5  ;;  %vm870_vm15 = vmand %vm866_vm4, %vm868_vm9  ;;  %v961_v48 = vrot.slane %v960_v18, 2  ;;  %vm972_vm4 = vcmp.le.s32.totalorder %v971_v47, 8 }
 0x20a   :  { %883 = vst.msk [vmem:[#allocation5 + $0xe] sm:$0x1] %vm275_vm0, %v1017_v63  ;;  %vm876_vm10 = vmand %vm870_vm15, %vm873_vm14  ;;  %v953_v14 = vmin.f32 %v951_v46, %v952_v45 }
 0x20b   :  { %v1016_v6 = vsel %vm876_vm10, 1.0, %v2047_v5  ;;  %v962_v4 = vmin.f32 %v960_v18, %v961_v48  ;;  %vm2084_vm13 = vmmov %vm2081_vm8 }
 0x20c   :  { %882 = vst.msk [vmem:[#allocation5 + $0x6] sm:$0x1] %vm275_vm0, %v1016_v6  ;;  %v954_v21 = vrot.slane %v953_v14, 2  ;;  %v901_v39 = vsel %vm2084_vm13, %v896_v44, 0.0 }
 0x20d   :  { %v963_v19 = vrot.slane %v962_v4, 1  ;;  %v903_v26 = vadd.f32 %v901_v39, %v1773_v1 }
 0x20e   :  { %v955_v53 = vmin.f32 %v953_v14, %v954_v21 }
 0x20f   :  { %v964_v38 = vmin.f32 %v962_v4, %v963_v19  ;;  %vm967_vm9 = vcmp.ge.f32.partialorder %v903_v26, 7.5 }
 0x210   :  { %v956_v51 = vrot.slane %v955_v53, 1 }
 0x211   :  { %vm966_vm12 = vcmp.ge.f32.partialorder %v964_v38, 0.9 }
 0x212   :  { %vm970_vm14 = vmand %vm966_vm12, %vm968_vm11  ;;  %v957_v35 = vmin.f32 %v955_v53, %v956_v51 }
 0x213   :  { %vm976_vm1 = vmand %vm970_vm14, %vm972_vm4 }
 0x214   :  { %v1019_v10 = vsel %vm976_vm1, 1.0, %v2047_v5  ;;  %vm965_vm2 = vcmp.ge.f32.partialorder %v957_v35, 0.9 }
 0x215   :  { %982 = vst.msk [vmem:[#allocation5 + $0xf] sm:$0x1] %vm275_vm0, %v1019_v10  ;;  %vm969_vm15 = vmand %vm965_vm2, %vm967_vm9 }
 0x216   :  { %vm975_vm3 = vmand %vm969_vm15, %vm972_vm4 }
 0x217   :  { %v1018_v49 = vsel %vm975_vm3, 1.0, %v2047_v5 }
 0x218   :  { %981 = vst.msk [vmem:[#allocation5 + $0x7] sm:$0x1] %vm275_vm0, %v1018_v49 }
 0x219   :  { %1149 = shalt.err (!%p1146_p12)
}
 0x21a   :  { %s1150_s9 = scalar_lea.hbm %s1974_s2, 256 }
 0x21b   :  { %p1151_p13 = scmp.ne.s32.totalorder %s1974_s2, %s1150_s9  ;;  %p1154_p0 = scmp.lt.u32.totalorder %s1150_s9, %s1974_s2 }
 0x21d   :  { %p1156_p1 = pnand %p1154_p0, %p1151_p13 }
 0x21f   :  { %1159 = shalt.err (!%p1156_p1)
}
 0x220   :  { %994 = dma.vmem_to_hbm [thread:$0]  %s989_s5, 256, %s1974_s2, [#allocation4], %s1165_s19, %s1165_s19, %s1166_s20  }
 0x221   :  { %1162 = dma.done.wait [#allocation4], 256  }
 0x222   :  { %1163 = vsyncadd [#allocation4], 4294967040 }
 0x223   :  { %998 = vsyncpa [#allocation3], 1 }
 0x224   :  { %999 = vsyncpa [#allocation4], 1 }

</bundles_post_ra>
